<compile_context>
chip_gen: v7x
topology: tpu7x:2x2x1
jax: 0.10.0
libtpu: 0.0.40
codegen_flags: <defaults>
</compile_context>

<pallas_src>
import jax
import jax.numpy as jnp
from jax import lax
from jax.experimental import pallas as pl
from jax.experimental.pallas import tpu as pltpu

# Whole-array-in-VMEM spec (no grid: each kernel is a single invocation on small tiles).
VMEM_SPEC = pl.BlockSpec(memory_space=pltpu.MemorySpace.VMEM)


# ----------------------------------------------------------------------------
# Kernel 1: fused dual-modality LSTM encoder (visual + acoustic in one kernel)
# ----------------------------------------------------------------------------

def _dual_lstm_kernel(x_ref, mask_ref, wgx_ref, wgh_ref, bg_ref, wo_ref, bo_ref,
                      out_ref):
    """Two single-layer unidirectional LSTMs (visual + acoustic) fused into one.

    x_ref    : [T, B, Fv+Fa]   time-major concatenated inputs
    mask_ref : [T, B, Hv+Ha]   1.0 while t < length (per modality, per row)
    wgx_ref  : [Fv+Fa, 4*(Hv+Ha)]  block-diagonal input->gate weights
    wgh_ref  : [Hv+Ha, 4*(Hv+Ha)]  block-diagonal hidden->gate weights
    bg_ref   : [1, 4*(Hv+Ha)]      b_ih + b_hh, gate-major (i, f, g, o)
    wo_ref   : [Hv+Ha, Dv+Da]      block-diagonal RNNEncoder output Linear
    bo_ref   : [1, Dv+Da]
    out_ref  : [B, Dv+Da]          [visual_h | acoustic_h]

    Gate columns are laid out gate-major ([i_v|i_a|f_v|f_a|g_v|g_a|o_v|o_a]) so
    each 32-wide gate slice lines up with the combined state layout [h_v | h_a].
    pack_padded_sequence semantics: the state of row b freezes once t >= length.
    """
    seq_len, batch, _ = x_ref.shape
    hc = wgh_ref.shape[0]

    h = jnp.zeros((batch, hc), jnp.float32)
    c = jnp.zeros((batch, hc), jnp.float32)

    # T is small and static: fully unrolled Python loop gives the scheduler full
    # visibility; each step issues one 128-lane-wide gate matmul pair.
    for t in range(seq_len):
        g = (jnp.dot(x_ref[t], wgx_ref[...], preferred_element_type=jnp.float32)
             + jnp.dot(h, wgh_ref[...], preferred_element_type=jnp.float32)
             + bg_ref[...])
        i_g = jax.nn.sigmoid(g[:, 0 * hc:1 * hc])
        f_g = jax.nn.sigmoid(g[:, 1 * hc:2 * hc])
        g_g = jnp.tanh(g[:, 2 * hc:3 * hc])
        o_g = jax.nn.sigmoid(g[:, 3 * hc:4 * hc])
        c_new = f_g * c + i_g * g_g
        h_new = o_g * jnp.tanh(c_new)
        m = mask_ref[t]                           # [B, Hc] float {0, 1}
        h = m * h_new + (1.0 - m) * h             # freeze past sequence length
        c = m * c_new + (1.0 - m) * c

    out_ref[...] = (jnp.dot(h, wo_ref[...], preferred_element_type=jnp.float32)
                    + bo_ref[...])


# ----------------------------------------------------------------------------
# Kernel 2: fused head (CLS LayerNorm + MMILB(tv,ta) + SubNet + CPC_zt)
# ----------------------------------------------------------------------------

def _head_kernel(emb_ref, lng_ref, lnb_ref, enc_ref,
                 miw1_ref, mib1_ref, miw2_ref, mib2_ref,
                 fw1_ref, fb1_ref, fw2_ref, fb2_ref, fw3_ref, fb3_ref,
                 cw_ref, cb_ref,
                 preds_ref, scal_ref):
    """Everything after the encoders, in one launch.

    emb_ref : [B, Dt]  pre-summed (word+pos+type) embedding of the CLS token
    enc_ref : [B, Dv+Da] = [visual_h | acoustic_h]
    MMILB weights are stacked so mu/logvar for tv and ta come out of two matmuls
    with column layout [mu_tv | mu_ta | lv_tv | lv_ta]; the mu half lines up
    with enc_ref, so lld_tv + lld_ta = sum(positive_all) / B.
    Outputs: preds [B, n_class]; scal [1, 128] with lane0 = lld, lane1 = nce_t.
    """
    batch = emb_ref.shape[0]

    # --- LanguageEmbeddingLayer: BERT embedding LayerNorm (CLS row only) ---
    x = emb_ref[...]
    mu = jnp.mean(x, axis=-1, keepdims=True)
    var = jnp.mean((x - mu) ** 2, axis=-1, keepdims=True)
    text = (x - mu) * lax.rsqrt(var + 1e-12) * lng_ref[...] + lnb_ref[...]

    enc = enc_ref[...]
    mi_w = enc.shape[-1]                    # Dv + Da

    # --- MMILB (tv & ta fused): Linear-ReLU-Linear mu / logvar MLPs ---
    h1 = jnp.maximum(
        jnp.dot(text, miw1_ref[...], preferred_element_type=jnp.float32)
        + mib1_ref[...], 0.0)
    g2 = (jnp.dot(h1, miw2_ref[...], preferred_element_type=jnp.float32)
          + mib2_ref[...])
    mu_all = g2[:, :mi_w]                   # [mu_tv | mu_ta]
    lv_all = g2[:, mi_w:]                   # [lv_tv | lv_ta]
    positive = -((mu_all - enc) ** 2) / (2.0 * jnp.exp(lv_all))
    lld = jnp.sum(positive, axis=1, keepdims=True)
    lld = jnp.sum(lld, axis=0, keepdims=True) / batch          # [1,1] = lld_tv+lld_ta

    # --- SubNet fusion projection ---
    y1 = jnp.tanh(jnp.dot(text, fw1_ref[...],
                          preferred_element_type=jnp.float32) + fb1_ref[...])
    fusion = jnp.tanh(jnp.dot(y1, fw2_ref[...],
                              preferred_element_type=jnp.float32) + fb2_ref[...])
    preds_ref[...] = (jnp.dot(fusion, fw3_ref[...],
                              preferred_element_type=jnp.float32) + fb3_ref[...])

    # --- CPC(text, fusion): n_layers=1 ---
    x_pred = (jnp.dot(fusion, cw_ref[...],
                      preferred_element_type=jnp.float32) + cb_ref[...])
    x_pred = x_pred * lax.rsqrt(jnp.sum(x_pred * x_pred, axis=1, keepdims=True) + 1e-12)
    xn = text * lax.rsqrt(jnp.sum(text * text, axis=1, keepdims=True) + 1e-12)
    pos = jnp.sum(xn * x_pred, axis=1, keepdims=True)                         # [B,1]
    scores = jnp.dot(xn, x_pred.T, preferred_element_type=jnp.float32)        # [B,B]
    mmax = jnp.max(scores, axis=1, keepdims=True)
    neg = mmax + jnp.log(jnp.sum(jnp.exp(scores - mmax), axis=1, keepdims=True))
    nce = -jnp.sum(pos - neg, axis=0, keepdims=True) / batch                  # [1,1]

    # pack the two scalars into one lane-dense output
    lane = lax.broadcasted_iota(jnp.int32, (1, 128), 1)
    scal_ref[...] = jnp.where(lane == 0, lld, 0.0) + jnp.where(lane == 1, nce, 0.0)


# ----------------------------------------------------------------------------
# Wrappers (pallas_call glue)
# ----------------------------------------------------------------------------

def pallas_dual_lstm(visual, acoustic, v_len, a_len, p, hv, ha):
    """visual: [Tv, B, Fv], acoustic: [Ta, B, Fa]. Returns [B, Dv+Da]."""
    tv, batch, _ = visual.shape
    ta = acoustic.shape[0]
    t_max = max(tv, ta)
    if tv < t_max:
        visual = jnp.pad(visual, ((0, t_max - tv), (0, 0), (0, 0)))
    if ta < t_max:
        acoustic = jnp.pad(acoustic, ((0, t_max - ta), (0, 0), (0, 0)))
    x_comb = jnp.concatenate([visual, acoustic], axis=-1)        # [T, B, Fv+Fa]

    # precompute the per-step validity mask once (glue): [T, B, Hv+Ha]
    t_idx = jnp.arange(t_max, dtype=jnp.int32)[:, None]
    mask_v = (t_idx < v_len[None, :].astype(jnp.int32)).astype(jnp.float32)
    mask_a = (t_idx < a_len[None, :].astype(jnp.int32)).astype(jnp.float32)
    mask = jnp.concatenate(
        [jnp.broadcast_to(mask_v[:, :, None], (t_max, batch, hv)),
         jnp.broadcast_to(mask_a[:, :, None], (t_max, batch, ha))], axis=2)

    d_out = p["wo"].shape[-1]
    return pl.pallas_call(
        _dual_lstm_kernel,
        out_shape=jax.ShapeDtypeStruct((batch, d_out), jnp.float32),
        in_specs=[VMEM_SPEC] * 7,
        out_specs=VMEM_SPEC,
    )(x_comb, mask, p["wgx"], p["wgh"], p["bg"], p["wo"], p["bo"])


def pallas_head(params, emb_cls, enc_out):
    tp = params["text"]
    mi = params["mi_fused"]
    fp = params["fusion_prj"]
    cp = params["cpc_zt"]
    batch = emb_cls.shape[0]
    n_class = fp["w3"].shape[-1]
    preds, scal = pl.pallas_call(
        _head_kernel,
        out_shape=(jax.ShapeDtypeStruct((batch, n_class), jnp.float32),
                   jax.ShapeDtypeStruct((1, 128), jnp.float32)),
        in_specs=[VMEM_SPEC] * 16,
        out_specs=(VMEM_SPEC, VMEM_SPEC),
    )(emb_cls, tp["ln_gamma"], tp["ln_beta"], enc_out,
      mi["w1"], mi["b1"], mi["w2"], mi["b2"],
      fp["w1"], fp["b1"], fp["w2"], fp["b2"], fp["w3"], fp["b3"],
      cp["w"], cp["b"])
    return preds, scal[0, 0], scal[0, 1]


# ----------------------------------------------------------------------------
# Parameter construction (deterministic) + one-time kernel-layout fusion
# ----------------------------------------------------------------------------

def _linear_params(key, in_dim, out_dim, scale=0.1):
    kw, kb = jax.random.split(key)
    w = jax.random.normal(kw, (in_dim, out_dim), jnp.float32) * scale
    b = jax.random.normal(kb, (1, out_dim), jnp.float32) * scale
    return w, b


def _lstm_encoder_params(key, in_dim, hidden, out_dim):
    ks = jax.random.split(key, 4)
    wih = jax.random.normal(ks[0], (4, in_dim, hidden), jnp.float32) * 0.1   # i, f, g, o
    whh = jax.random.normal(ks[1], (4, hidden, hidden), jnp.float32) * 0.1
    b = jax.random.normal(ks[2], (4, 1, hidden), jnp.float32) * 0.1          # b_ih + b_hh
    wo, bo = _linear_params(ks[3], hidden, out_dim)
    return {"wih": wih, "whh": whh, "b": b, "wo": wo, "bo": bo}


def _mmilb_params(key, x_size, y_size):
    ks = jax.random.split(key, 4)
    w1m, b1m = _linear_params(ks[0], x_size, y_size)
    w2m, b2m = _linear_params(ks[1], y_size, y_size)
    w1v, b1v = _linear_params(ks[2], x_size, y_size)
    w2v, b2v = _linear_params(ks[3], y_size, y_size)
    return {"w1_mu": w1m, "b1_mu": b1m, "w2_mu": w2m, "b2_mu": b2m,
            "w1_lv": w1v, "b1_lv": b1v, "w2_lv": w2v, "b2_lv": b2v}


def _subnet_params(key, in_size, hidden, n_class):
    ks = jax.random.split(key, 3)
    w1, b1 = _linear_params(ks[0], in_size, hidden)
    w2, b2 = _linear_params(ks[1], hidden, hidden)
    w3, b3 = _linear_params(ks[2], hidden, n_class)
    return {"w1": w1, "b1": b1, "w2": w2, "b2": b2, "w3": w3, "b3": b3}


def _cpc_params(key, x_size, y_size):
    w, b = _linear_params(key, y_size, x_size)
    return {"w": w, "b": b}


def _fuse_dual_encoder(pv, pa):
    """Block-diagonal stacking of the two RNNEncoders (done once at init)."""
    fv, hv = pv["wih"].shape[1], pv["wih"].shape[2]
    fa, ha = pa["wih"].shape[1], pa["wih"].shape[2]
    hc = hv + ha
    wgx = jnp.zeros((fv + fa, 4 * hc), jnp.float32)
    wgh = jnp.zeros((hc, 4 * hc), jnp.float32)
    bg = jnp.zeros((1, 4 * hc), jnp.float32)
    for k in range(4):                                  # PyTorch gate order i,f,g,o
        cv = k * hc
        ca = k * hc + hv
        wgx = wgx.at[:fv, cv:cv + hv].set(pv["wih"][k])
        wgx = wgx.at[fv:, ca:ca + ha].set(pa["wih"][k])
        wgh = wgh.at[:hv, cv:cv + hv].set(pv["whh"][k])
        wgh = wgh.at[hv:, ca:ca + ha].set(pa["whh"][k])
        bg = bg.at[:, cv:cv + hv].set(pv["b"][k])
        bg = bg.at[:, ca:ca + ha].set(pa["b"][k])
    dv, da = pv["wo"].shape[1], pa["wo"].shape[1]
    wo = jnp.zeros((hc, dv + da), jnp.float32)
    wo = wo.at[:hv, :dv].set(pv["wo"]).at[hv:, dv:].set(pa["wo"])
    bo = jnp.concatenate([pv["bo"], pa["bo"]], axis=1)
    return {"wgx": wgx, "wgh": wgh, "bg": bg, "wo": wo, "bo": bo}


def _fuse_mmilb(ptv, pta):
    """Stack mi_tv + mi_ta (mu and logvar MLPs) into a single pair of matmuls.
    Column layout: [ mu_tv | mu_ta | lv_tv | lv_ta ]."""
    w1 = jnp.concatenate([ptv["w1_mu"], pta["w1_mu"], ptv["w1_lv"], pta["w1_lv"]], axis=1)
    b1 = jnp.concatenate([ptv["b1_mu"], pta["b1_mu"], ptv["b1_lv"], pta["b1_lv"]], axis=1)
    blocks = [ptv["w2_mu"], pta["w2_mu"], ptv["w2_lv"], pta["w2_lv"]]
    n = sum(blk.shape[0] for blk in blocks)
    w2 = jnp.zeros((n, n), jnp.float32)
    off = 0
    for blk in blocks:
        sz = blk.shape[0]
        w2 = w2.at[off:off + sz, off:off + sz].set(blk)
        off += sz
    b2 = jnp.concatenate([ptv["b2_mu"], pta["b2_mu"], ptv["b2_lv"], pta["b2_lv"]], axis=1)
    return {"w1": w1, "b1": b1, "w2": w2, "b2": b2}


def init_mmim_params(key, cfg):
    ks = jax.random.split(key, 12)
    text = {
        "word_emb": jax.random.normal(ks[0], (cfg["vocab"], cfg["d_tin"]), jnp.float32) * 0.1,
        "pos_emb": jax.random.normal(ks[1], (cfg["bert_len"], cfg["d_tin"]), jnp.float32) * 0.1,
        "type_emb": jax.random.normal(ks[2], (2, cfg["d_tin"]), jnp.float32) * 0.1,
        "ln_gamma": jnp.ones((1, cfg["d_tin"]), jnp.float32),
        "ln_beta": jnp.zeros((1, cfg["d_tin"]), jnp.float32),
    }
    visual_enc = _lstm_encoder_params(ks[3], cfg["d_vin"], cfg["d_vh"], cfg["d_vout"])
    acoustic_enc = _lstm_encoder_params(ks[4], cfg["d_ain"], cfg["d_ah"], cfg["d_aout"])
    mi_tv = _mmilb_params(ks[5], cfg["d_tout"], cfg["d_vout"])
    mi_ta = _mmilb_params(ks[6], cfg["d_tout"], cfg["d_aout"])
    fusion_prj = _subnet_params(ks[7], cfg["d_tout"], cfg["d_prjh"], cfg["n_class"])
    cpc_zt = _cpc_params(ks[8], cfg["d_tout"], cfg["d_prjh"])
    # cpc_zv / cpc_za exist in the module but their outputs are zeroed before use
    # (torch.zeros_like) on this path, so they are never evaluated (dead work removed).
    params = {
        "text": text,
        "visual_enc": visual_enc,
        "acoustic_enc": acoustic_enc,
        "mi_tv": mi_tv,
        "mi_ta": mi_ta,
        "fusion_prj": fusion_prj,
        "cpc_zt": cpc_zt,
    }
    # one-time fusion into kernel-friendly block-diagonal layouts
    params["dual_enc"] = _fuse_dual_encoder(visual_enc, acoustic_enc)
    params["mi_fused"] = _fuse_mmilb(mi_tv, mi_ta)
    return params


# ----------------------------------------------------------------------------
# MMIM forward (inference path: is_train=False, is_test=False, y=None, add_va=False)
# ----------------------------------------------------------------------------

def mmim_forward(params, bert_sent, bert_sent_type, bert_sent_mask,
                 visual, acoustic, v_len, a_len):
    tp = params["text"]
    # Language embedding stage.  Only the CLS row (token 0) is consumed downstream
    # (text = enc_word[:, 0, :]) and LayerNorm is per-token, so compute just that row.
    # TODO(synk): the original uses a pretrained 12-layer BERT; only the embedding +
    # LayerNorm stage is reproduced (no checkpoint loading in-script), so
    # bert_sent_mask is unused here.
    emb_cls = (tp["word_emb"][bert_sent[:, 0]]
               + tp["pos_emb"][0][None, :]
               + tp["type_emb"][bert_sent_type[:, 0]])           # [B, d_tin]

    hv = params["visual_enc"]["whh"].shape[-1]
    ha = params["acoustic_enc"]["whh"].shape[-1]
    enc_out = pallas_dual_lstm(visual, acoustic, v_len, a_len,
                               params["dual_enc"], hv, ha)       # [B, d_vout+d_aout]

    # TODO(synk): is_train / is_test random modality-corruption branches are
    # training-time data augmentation and not part of the inference path.

    preds, lld, nce_t = pallas_head(params, emb_cls, enc_out)

    # nce_v / nce_a are computed then zeroed in the reference; skipped here.
    nce = nce_t
    pn_dic = {"tv": {"pos": None, "neg": None},
              "ta": {"pos": None, "neg": None},
              "va": None}                                        # add_va=False
    H = 0.0                                                      # y=None path
    return lld, nce, preds, pn_dic, H


# ----------------------------------------------------------------------------
# Main
# ----------------------------------------------------------------------------

if __name__ == "__main__":
    cfg = dict(
        vocab=50, bert_len=10,          # seq_len(8) + 2 BERT specials
        d_tin=32, d_tout=32,
        d_vin=20, d_vh=16, d_vout=16,
        d_ain=12, d_ah=16, d_aout=16,
        d_prjh=32, n_class=1,
    )
    B, L, Tv, Ta = 4, cfg["bert_len"], 8, 8

    key = jax.random.PRNGKey(0)
    k_par, k_bs, k_bt, k_vis, k_aco, k_vl, k_al = jax.random.split(key, 7)

    params = init_mmim_params(k_par, cfg)

    bert_sent = jax.random.randint(k_bs, (B, L), 0, cfg["vocab"], dtype=jnp.int32)
    bert_sent_type = jnp.zeros((B, L), jnp.int32)
    bert_sent_mask = jnp.ones((B, L), jnp.float32)
    visual = jax.random.normal(k_vis, (Tv, B, cfg["d_vin"]), jnp.float32)
    acoustic = jax.random.normal(k_aco, (Ta, B, cfg["d_ain"]), jnp.float32)
    v_len = jax.random.randint(k_vl, (B,), 2, Tv + 1, dtype=jnp.int32)
    a_len = jax.random.randint(k_al, (B,), 2, Ta + 1, dtype=jnp.int32)

    fwd = jax.jit(mmim_forward)
    lld, nce, preds, pn_dic, H = fwd(
        params, bert_sent, bert_sent_type, bert_sent_mask,
        visual, acoustic, v_len, a_len)

    jax.block_until_ready((lld, nce, preds))
    print("KERNEL_OK")
</pallas_src>

<mosaic_0001>
module attributes {stable_mosaic.version = 11 : i64} {
  func.func @_dual_lstm_kernel(%arg0: memref<8x4x32xf32, #tpu.memory_space<vmem>>, %arg1: memref<8x4x32xf32, #tpu.memory_space<vmem>>, %arg2: memref<32x128xf32, #tpu.memory_space<vmem>>, %arg3: memref<32x128xf32, #tpu.memory_space<vmem>>, %arg4: memref<1x128xf32, #tpu.memory_space<vmem>>, %arg5: memref<32x32xf32, #tpu.memory_space<vmem>>, %arg6: memref<1x32xf32, #tpu.memory_space<vmem>>, %arg7: memref<4x32xf32, #tpu.memory_space<vmem>>) attributes {dimension_semantics = [], scalar_prefetch = 0 : i64, scratch_operands = 0 : i64, tpu.core_type = #tpu.core_type<tc>} {
    %cst = arith.constant 0.000000e+00 : f32
    %0 = vector.broadcast %cst : f32 to vector<4x32xf32>
    %cst_0 = arith.constant 0.000000e+00 : f32
    %1 = vector.broadcast %cst_0 : f32 to vector<4x32xf32>
    %c0 = arith.constant 0 : index
    %c0_1 = arith.constant 0 : index
    %c0_2 = arith.constant 0 : index
    %2 = vector.load %arg0[%c0, %c0_1, %c0_2] : memref<8x4x32xf32, #tpu.memory_space<vmem>>, vector<1x4x32xf32>
    %3 = vector.shape_cast %2 : vector<1x4x32xf32> to vector<4x32xf32>
    %c0_3 = arith.constant 0 : index
    %c0_4 = arith.constant 0 : index
    %4 = vector.load %arg2[%c0_3, %c0_4] : memref<32x128xf32, #tpu.memory_space<vmem>>, vector<32x128xf32>
    %cst_5 = arith.constant dense<0.000000e+00> : vector<4x128xf32>
    %5 = tpu.matmul %3, %4, %cst_5 {dimension_numbers = #tpu.dot_dimension_numbers<[1], [0], [0], [1], [0, 0, 1, 1], [], []>} : vector<4x32xf32>, vector<32x128xf32>, vector<4x128xf32> -> vector<4x128xf32>
    %c0_6 = arith.constant 0 : index
    %c0_7 = arith.constant 0 : index
    %6 = vector.load %arg3[%c0_6, %c0_7] : memref<32x128xf32, #tpu.memory_space<vmem>>, vector<32x128xf32>
    %cst_8 = arith.constant dense<0.000000e+00> : vector<4x128xf32>
    %7 = tpu.matmul %0, %6, %cst_8 {dimension_numbers = #tpu.dot_dimension_numbers<[1], [0], [0], [1], [0, 0, 1, 1], [], []>} : vector<4x32xf32>, vector<32x128xf32>, vector<4x128xf32> -> vector<4x128xf32>
    %8 = arith.addf %5, %7 : vector<4x128xf32>
    %c0_9 = arith.constant 0 : index
    %c0_10 = arith.constant 0 : index
    %9 = vector.load %arg4[%c0_9, %c0_10] : memref<1x128xf32, #tpu.memory_space<vmem>>, vector<1x128xf32>
    %10 = vector.broadcast %9 : vector<1x128xf32> to vector<4x128xf32>
    %11 = arith.addf %8, %10 : vector<4x128xf32>
    %12 = vector.extract_strided_slice %11 {offsets = [0, 0], sizes = [4, 32], strides = [1, 1]} : vector<4x128xf32> to vector<4x32xf32>
    %13 = arith.negf %12 : vector<4x32xf32>
    %14 = math.exp %13 : vector<4x32xf32>
    %cst_11 = arith.constant 1.000000e+00 : f32
    %15 = vector.broadcast %cst_11 : f32 to vector<4x32xf32>
    %16 = arith.addf %15, %14 : vector<4x32xf32>
    %17 = arith.divf %15, %16 : vector<4x32xf32>
    %18 = vector.extract_strided_slice %11 {offsets = [0, 32], sizes = [4, 32], strides = [1, 1]} : vector<4x128xf32> to vector<4x32xf32>
    %19 = arith.negf %18 : vector<4x32xf32>
    %20 = math.exp %19 : vector<4x32xf32>
    %cst_12 = arith.constant 1.000000e+00 : f32
    %21 = vector.broadcast %cst_12 : f32 to vector<4x32xf32>
    %22 = arith.addf %21, %20 : vector<4x32xf32>
    %23 = arith.divf %21, %22 : vector<4x32xf32>
    %24 = vector.extract_strided_slice %11 {offsets = [0, 64], sizes = [4, 32], strides = [1, 1]} : vector<4x128xf32> to vector<4x32xf32>
    %25 = math.tanh %24 : vector<4x32xf32>
    %26 = vector.extract_strided_slice %11 {offsets = [0, 96], sizes = [4, 32], strides = [1, 1]} : vector<4x128xf32> to vector<4x32xf32>
    %27 = arith.negf %26 : vector<4x32xf32>
    %28 = math.exp %27 : vector<4x32xf32>
    %cst_13 = arith.constant 1.000000e+00 : f32
    %29 = vector.broadcast %cst_13 : f32 to vector<4x32xf32>
    %30 = arith.addf %29, %28 : vector<4x32xf32>
    %31 = arith.divf %29, %30 : vector<4x32xf32>
    %32 = arith.mulf %23, %1 : vector<4x32xf32>
    %33 = arith.mulf %17, %25 : vector<4x32xf32>
    %34 = arith.addf %32, %33 : vector<4x32xf32>
    %35 = math.tanh %34 : vector<4x32xf32>
    %36 = arith.mulf %31, %35 : vector<4x32xf32>
    %c0_14 = arith.constant 0 : index
    %c0_15 = arith.constant 0 : index
    %c0_16 = arith.constant 0 : index
    %37 = vector.load %arg1[%c0_14, %c0_15, %c0_16] : memref<8x4x32xf32, #tpu.memory_space<vmem>>, vector<1x4x32xf32>
    %38 = vector.shape_cast %37 : vector<1x4x32xf32> to vector<4x32xf32>
    %39 = arith.mulf %38, %36 : vector<4x32xf32>
    %cst_17 = arith.constant 1.000000e+00 : f32
    %40 = vector.broadcast %cst_17 : f32 to vector<4x32xf32>
    %41 = arith.subf %40, %38 : vector<4x32xf32>
    %42 = arith.mulf %41, %0 : vector<4x32xf32>
    %43 = arith.addf %39, %42 : vector<4x32xf32>
    %44 = arith.mulf %38, %34 : vector<4x32xf32>
    %cst_18 = arith.constant 1.000000e+00 : f32
    %45 = vector.broadcast %cst_18 : f32 to vector<4x32xf32>
    %46 = arith.subf %45, %38 : vector<4x32xf32>
    %47 = arith.mulf %46, %1 : vector<4x32xf32>
    %48 = arith.addf %44, %47 : vector<4x32xf32>
    %c1 = arith.constant 1 : index
    %c0_19 = arith.constant 0 : index
    %c0_20 = arith.constant 0 : index
    %49 = vector.load %arg0[%c1, %c0_19, %c0_20] : memref<8x4x32xf32, #tpu.memory_space<vmem>>, vector<1x4x32xf32>
    %50 = vector.shape_cast %49 : vector<1x4x32xf32> to vector<4x32xf32>
    %c0_21 = arith.constant 0 : index
    %c0_22 = arith.constant 0 : index
    %51 = vector.load %arg2[%c0_21, %c0_22] : memref<32x128xf32, #tpu.memory_space<vmem>>, vector<32x128xf32>
    %cst_23 = arith.constant dense<0.000000e+00> : vector<4x128xf32>
    %52 = tpu.matmul %50, %51, %cst_23 {dimension_numbers = #tpu.dot_dimension_numbers<[1], [0], [0], [1], [0, 0, 1, 1], [], []>} : vector<4x32xf32>, vector<32x128xf32>, vector<4x128xf32> -> vector<4x128xf32>
    %c0_24 = arith.constant 0 : index
    %c0_25 = arith.constant 0 : index
    %53 = vector.load %arg3[%c0_24, %c0_25] : memref<32x128xf32, #tpu.memory_space<vmem>>, vector<32x128xf32>
    %cst_26 = arith.constant dense<0.000000e+00> : vector<4x128xf32>
    %54 = tpu.matmul %43, %53, %cst_26 {dimension_numbers = #tpu.dot_dimension_numbers<[1], [0], [0], [1], [0, 0, 1, 1], [], []>} : vector<4x32xf32>, vector<32x128xf32>, vector<4x128xf32> -> vector<4x128xf32>
    %55 = arith.addf %52, %54 : vector<4x128xf32>
    %c0_27 = arith.constant 0 : index
    %c0_28 = arith.constant 0 : index
    %56 = vector.load %arg4[%c0_27, %c0_28] : memref<1x128xf32, #tpu.memory_space<vmem>>, vector<1x128xf32>
    %57 = vector.broadcast %56 : vector<1x128xf32> to vector<4x128xf32>
    %58 = arith.addf %55, %57 : vector<4x128xf32>
    %59 = vector.extract_strided_slice %58 {offsets = [0, 0], sizes = [4, 32], strides = [1, 1]} : vector<4x128xf32> to vector<4x32xf32>
    %60 = arith.negf %59 : vector<4x32xf32>
    %61 = math.exp %60 : vector<4x32xf32>
    %cst_29 = arith.constant 1.000000e+00 : f32
    %62 = vector.broadcast %cst_29 : f32 to vector<4x32xf32>
    %63 = arith.addf %62, %61 : vector<4x32xf32>
    %64 = arith.divf %62, %63 : vector<4x32xf32>
    %65 = vector.extract_strided_slice %58 {offsets = [0, 32], sizes = [4, 32], strides = [1, 1]} : vector<4x128xf32> to vector<4x32xf32>
    %66 = arith.negf %65 : vector<4x32xf32>
    %67 = math.exp %66 : vector<4x32xf32>
    %cst_30 = arith.constant 1.000000e+00 : f32
    %68 = vector.broadcast %cst_30 : f32 to vector<4x32xf32>
    %69 = arith.addf %68, %67 : vector<4x32xf32>
    %70 = arith.divf %68, %69 : vector<4x32xf32>
    %71 = vector.extract_strided_slice %58 {offsets = [0, 64], sizes = [4, 32], strides = [1, 1]} : vector<4x128xf32> to vector<4x32xf32>
    %72 = math.tanh %71 : vector<4x32xf32>
    %73 = vector.extract_strided_slice %58 {offsets = [0, 96], sizes = [4, 32], strides = [1, 1]} : vector<4x128xf32> to vector<4x32xf32>
    %74 = arith.negf %73 : vector<4x32xf32>
    %75 = math.exp %74 : vector<4x32xf32>
    %cst_31 = arith.constant 1.000000e+00 : f32
    %76 = vector.broadcast %cst_31 : f32 to vector<4x32xf32>
    %77 = arith.addf %76, %75 : vector<4x32xf32>
    %78 = arith.divf %76, %77 : vector<4x32xf32>
    %79 = arith.mulf %70, %48 : vector<4x32xf32>
    %80 = arith.mulf %64, %72 : vector<4x32xf32>
    %81 = arith.addf %79, %80 : vector<4x32xf32>
    %82 = math.tanh %81 : vector<4x32xf32>
    %83 = arith.mulf %78, %82 : vector<4x32xf32>
    %c1_32 = arith.constant 1 : index
    %c0_33 = arith.constant 0 : index
    %c0_34 = arith.constant 0 : index
    %84 = vector.load %arg1[%c1_32, %c0_33, %c0_34] : memref<8x4x32xf32, #tpu.memory_space<vmem>>, vector<1x4x32xf32>
    %85 = vector.shape_cast %84 : vector<1x4x32xf32> to vector<4x32xf32>
    %86 = arith.mulf %85, %83 : vector<4x32xf32>
    %cst_35 = arith.constant 1.000000e+00 : f32
    %87 = vector.broadcast %cst_35 : f32 to vector<4x32xf32>
    %88 = arith.subf %87, %85 : vector<4x32xf32>
    %89 = arith.mulf %88, %43 : vector<4x32xf32>
    %90 = arith.addf %86, %89 : vector<4x32xf32>
    %91 = arith.mulf %85, %81 : vector<4x32xf32>
    %cst_36 = arith.constant 1.000000e+00 : f32
    %92 = vector.broadcast %cst_36 : f32 to vector<4x32xf32>
    %93 = arith.subf %92, %85 : vector<4x32xf32>
    %94 = arith.mulf %93, %48 : vector<4x32xf32>
    %95 = arith.addf %91, %94 : vector<4x32xf32>
    %c2 = arith.constant 2 : index
    %c0_37 = arith.constant 0 : index
    %c0_38 = arith.constant 0 : index
    %96 = vector.load %arg0[%c2, %c0_37, %c0_38] : memref<8x4x32xf32, #tpu.memory_space<vmem>>, vector<1x4x32xf32>
    %97 = vector.shape_cast %96 : vector<1x4x32xf32> to vector<4x32xf32>
    %c0_39 = arith.constant 0 : index
    %c0_40 = arith.constant 0 : index
    %98 = vector.load %arg2[%c0_39, %c0_40] : memref<32x128xf32, #tpu.memory_space<vmem>>, vector<32x128xf32>
    %cst_41 = arith.constant dense<0.000000e+00> : vector<4x128xf32>
    %99 = tpu.matmul %97, %98, %cst_41 {dimension_numbers = #tpu.dot_dimension_numbers<[1], [0], [0], [1], [0, 0, 1, 1], [], []>} : vector<4x32xf32>, vector<32x128xf32>, vector<4x128xf32> -> vector<4x128xf32>
    %c0_42 = arith.constant 0 : index
    %c0_43 = arith.constant 0 : index
    %100 = vector.load %arg3[%c0_42, %c0_43] : memref<32x128xf32, #tpu.memory_space<vmem>>, vector<32x128xf32>
    %cst_44 = arith.constant dense<0.000000e+00> : vector<4x128xf32>
    %101 = tpu.matmul %90, %100, %cst_44 {dimension_numbers = #tpu.dot_dimension_numbers<[1], [0], [0], [1], [0, 0, 1, 1], [], []>} : vector<4x32xf32>, vector<32x128xf32>, vector<4x128xf32> -> vector<4x128xf32>
    %102 = arith.addf %99, %101 : vector<4x128xf32>
    %c0_45 = arith.constant 0 : index
    %c0_46 = arith.constant 0 : index
    %103 = vector.load %arg4[%c0_45, %c0_46] : memref<1x128xf32, #tpu.memory_space<vmem>>, vector<1x128xf32>
    %104 = vector.broadcast %103 : vector<1x128xf32> to vector<4x128xf32>
    %105 = arith.addf %102, %104 : vector<4x128xf32>
    %106 = vector.extract_strided_slice %105 {offsets = [0, 0], sizes = [4, 32], strides = [1, 1]} : vector<4x128xf32> to vector<4x32xf32>
    %107 = arith.negf %106 : vector<4x32xf32>
    %108 = math.exp %107 : vector<4x32xf32>
    %cst_47 = arith.constant 1.000000e+00 : f32
    %109 = vector.broadcast %cst_47 : f32 to vector<4x32xf32>
    %110 = arith.addf %109, %108 : vector<4x32xf32>
    %111 = arith.divf %109, %110 : vector<4x32xf32>
    %112 = vector.extract_strided_slice %105 {offsets = [0, 32], sizes = [4, 32], strides = [1, 1]} : vector<4x128xf32> to vector<4x32xf32>
    %113 = arith.negf %112 : vector<4x32xf32>
    %114 = math.exp %113 : vector<4x32xf32>
    %cst_48 = arith.constant 1.000000e+00 : f32
    %115 = vector.broadcast %cst_48 : f32 to vector<4x32xf32>
    %116 = arith.addf %115, %114 : vector<4x32xf32>
    %117 = arith.divf %115, %116 : vector<4x32xf32>
    %118 = vector.extract_strided_slice %105 {offsets = [0, 64], sizes = [4, 32], strides = [1, 1]} : vector<4x128xf32> to vector<4x32xf32>
    %119 = math.tanh %118 : vector<4x32xf32>
    %120 = vector.extract_strided_slice %105 {offsets = [0, 96], sizes = [4, 32], strides = [1, 1]} : vector<4x128xf32> to vector<4x32xf32>
    %121 = arith.negf %120 : vector<4x32xf32>
    %122 = math.exp %121 : vector<4x32xf32>
    %cst_49 = arith.constant 1.000000e+00 : f32
    %123 = vector.broadcast %cst_49 : f32 to vector<4x32xf32>
    %124 = arith.addf %123, %122 : vector<4x32xf32>
    %125 = arith.divf %123, %124 : vector<4x32xf32>
    %126 = arith.mulf %117, %95 : vector<4x32xf32>
    %127 = arith.mulf %111, %119 : vector<4x32xf32>
    %128 = arith.addf %126, %127 : vector<4x32xf32>
    %129 = math.tanh %128 : vector<4x32xf32>
    %130 = arith.mulf %125, %129 : vector<4x32xf32>
    %c2_50 = arith.constant 2 : index
    %c0_51 = arith.constant 0 : index
    %c0_52 = arith.constant 0 : index
    %131 = vector.load %arg1[%c2_50, %c0_51, %c0_52] : memref<8x4x32xf32, #tpu.memory_space<vmem>>, vector<1x4x32xf32>
    %132 = vector.shape_cast %131 : vector<1x4x32xf32> to vector<4x32xf32>
    %133 = arith.mulf %132, %130 : vector<4x32xf32>
    %cst_53 = arith.constant 1.000000e+00 : f32
    %134 = vector.broadcast %cst_53 : f32 to vector<4x32xf32>
    %135 = arith.subf %134, %132 : vector<4x32xf32>
    %136 = arith.mulf %135, %90 : vector<4x32xf32>
    %137 = arith.addf %133, %136 : vector<4x32xf32>
    %138 = arith.mulf %132, %128 : vector<4x32xf32>
    %cst_54 = arith.constant 1.000000e+00 : f32
    %139 = vector.broadcast %cst_54 : f32 to vector<4x32xf32>
    %140 = arith.subf %139, %132 : vector<4x32xf32>
    %141 = arith.mulf %140, %95 : vector<4x32xf32>
    %142 = arith.addf %138, %141 : vector<4x32xf32>
    %c3 = arith.constant 3 : index
    %c0_55 = arith.constant 0 : index
    %c0_56 = arith.constant 0 : index
    %143 = vector.load %arg0[%c3, %c0_55, %c0_56] : memref<8x4x32xf32, #tpu.memory_space<vmem>>, vector<1x4x32xf32>
    %144 = vector.shape_cast %143 : vector<1x4x32xf32> to vector<4x32xf32>
    %c0_57 = arith.constant 0 : index
    %c0_58 = arith.constant 0 : index
    %145 = vector.load %arg2[%c0_57, %c0_58] : memref<32x128xf32, #tpu.memory_space<vmem>>, vector<32x128xf32>
    %cst_59 = arith.constant dense<0.000000e+00> : vector<4x128xf32>
    %146 = tpu.matmul %144, %145, %cst_59 {dimension_numbers = #tpu.dot_dimension_numbers<[1], [0], [0], [1], [0, 0, 1, 1], [], []>} : vector<4x32xf32>, vector<32x128xf32>, vector<4x128xf32> -> vector<4x128xf32>
    %c0_60 = arith.constant 0 : index
    %c0_61 = arith.constant 0 : index
    %147 = vector.load %arg3[%c0_60, %c0_61] : memref<32x128xf32, #tpu.memory_space<vmem>>, vector<32x128xf32>
    %cst_62 = arith.constant dense<0.000000e+00> : vector<4x128xf32>
    %148 = tpu.matmul %137, %147, %cst_62 {dimension_numbers = #tpu.dot_dimension_numbers<[1], [0], [0], [1], [0, 0, 1, 1], [], []>} : vector<4x32xf32>, vector<32x128xf32>, vector<4x128xf32> -> vector<4x128xf32>
    %149 = arith.addf %146, %148 : vector<4x128xf32>
    %c0_63 = arith.constant 0 : index
    %c0_64 = arith.constant 0 : index
    %150 = vector.load %arg4[%c0_63, %c0_64] : memref<1x128xf32, #tpu.memory_space<vmem>>, vector<1x128xf32>
    %151 = vector.broadcast %150 : vector<1x128xf32> to vector<4x128xf32>
    %152 = arith.addf %149, %151 : vector<4x128xf32>
    %153 = vector.extract_strided_slice %152 {offsets = [0, 0], sizes = [4, 32], strides = [1, 1]} : vector<4x128xf32> to vector<4x32xf32>
    %154 = arith.negf %153 : vector<4x32xf32>
    %155 = math.exp %154 : vector<4x32xf32>
    %cst_65 = arith.constant 1.000000e+00 : f32
    %156 = vector.broadcast %cst_65 : f32 to vector<4x32xf32>
    %157 = arith.addf %156, %155 : vector<4x32xf32>
    %158 = arith.divf %156, %157 : vector<4x32xf32>
    %159 = vector.extract_strided_slice %152 {offsets = [0, 32], sizes = [4, 32], strides = [1, 1]} : vector<4x128xf32> to vector<4x32xf32>
    %160 = arith.negf %159 : vector<4x32xf32>
    %161 = math.exp %160 : vector<4x32xf32>
    %cst_66 = arith.constant 1.000000e+00 : f32
    %162 = vector.broadcast %cst_66 : f32 to vector<4x32xf32>
    %163 = arith.addf %162, %161 : vector<4x32xf32>
    %164 = arith.divf %162, %163 : vector<4x32xf32>
    %165 = vector.extract_strided_slice %152 {offsets = [0, 64], sizes = [4, 32], strides = [1, 1]} : vector<4x128xf32> to vector<4x32xf32>
    %166 = math.tanh %165 : vector<4x32xf32>
    %167 = vector.extract_strided_slice %152 {offsets = [0, 96], sizes = [4, 32], strides = [1, 1]} : vector<4x128xf32> to vector<4x32xf32>
    %168 = arith.negf %167 : vector<4x32xf32>
    %169 = math.exp %168 : vector<4x32xf32>
    %cst_67 = arith.constant 1.000000e+00 : f32
    %170 = vector.broadcast %cst_67 : f32 to vector<4x32xf32>
    %171 = arith.addf %170, %169 : vector<4x32xf32>
    %172 = arith.divf %170, %171 : vector<4x32xf32>
    %173 = arith.mulf %164, %142 : vector<4x32xf32>
    %174 = arith.mulf %158, %166 : vector<4x32xf32>
    %175 = arith.addf %173, %174 : vector<4x32xf32>
    %176 = math.tanh %175 : vector<4x32xf32>
    %177 = arith.mulf %172, %176 : vector<4x32xf32>
    %c3_68 = arith.constant 3 : index
    %c0_69 = arith.constant 0 : index
    %c0_70 = arith.constant 0 : index
    %178 = vector.load %arg1[%c3_68, %c0_69, %c0_70] : memref<8x4x32xf32, #tpu.memory_space<vmem>>, vector<1x4x32xf32>
    %179 = vector.shape_cast %178 : vector<1x4x32xf32> to vector<4x32xf32>
    %180 = arith.mulf %179, %177 : vector<4x32xf32>
    %cst_71 = arith.constant 1.000000e+00 : f32
    %181 = vector.broadcast %cst_71 : f32 to vector<4x32xf32>
    %182 = arith.subf %181, %179 : vector<4x32xf32>
    %183 = arith.mulf %182, %137 : vector<4x32xf32>
    %184 = arith.addf %180, %183 : vector<4x32xf32>
    %185 = arith.mulf %179, %175 : vector<4x32xf32>
    %cst_72 = arith.constant 1.000000e+00 : f32
    %186 = vector.broadcast %cst_72 : f32 to vector<4x32xf32>
    %187 = arith.subf %186, %179 : vector<4x32xf32>
    %188 = arith.mulf %187, %142 : vector<4x32xf32>
    %189 = arith.addf %185, %188 : vector<4x32xf32>
    %c4 = arith.constant 4 : index
    %c0_73 = arith.constant 0 : index
    %c0_74 = arith.constant 0 : index
    %190 = vector.load %arg0[%c4, %c0_73, %c0_74] : memref<8x4x32xf32, #tpu.memory_space<vmem>>, vector<1x4x32xf32>
    %191 = vector.shape_cast %190 : vector<1x4x32xf32> to vector<4x32xf32>
    %c0_75 = arith.constant 0 : index
    %c0_76 = arith.constant 0 : index
    %192 = vector.load %arg2[%c0_75, %c0_76] : memref<32x128xf32, #tpu.memory_space<vmem>>, vector<32x128xf32>
    %cst_77 = arith.constant dense<0.000000e+00> : vector<4x128xf32>
    %193 = tpu.matmul %191, %192, %cst_77 {dimension_numbers = #tpu.dot_dimension_numbers<[1], [0], [0], [1], [0, 0, 1, 1], [], []>} : vector<4x32xf32>, vector<32x128xf32>, vector<4x128xf32> -> vector<4x128xf32>
    %c0_78 = arith.constant 0 : index
    %c0_79 = arith.constant 0 : index
    %194 = vector.load %arg3[%c0_78, %c0_79] : memref<32x128xf32, #tpu.memory_space<vmem>>, vector<32x128xf32>
    %cst_80 = arith.constant dense<0.000000e+00> : vector<4x128xf32>
    %195 = tpu.matmul %184, %194, %cst_80 {dimension_numbers = #tpu.dot_dimension_numbers<[1], [0], [0], [1], [0, 0, 1, 1], [], []>} : vector<4x32xf32>, vector<32x128xf32>, vector<4x128xf32> -> vector<4x128xf32>
    %196 = arith.addf %193, %195 : vector<4x128xf32>
    %c0_81 = arith.constant 0 : index
    %c0_82 = arith.constant 0 : index
    %197 = vector.load %arg4[%c0_81, %c0_82] : memref<1x128xf32, #tpu.memory_space<vmem>>, vector<1x128xf32>
    %198 = vector.broadcast %197 : vector<1x128xf32> to vector<4x128xf32>
    %199 = arith.addf %196, %198 : vector<4x128xf32>
    %200 = vector.extract_strided_slice %199 {offsets = [0, 0], sizes = [4, 32], strides = [1, 1]} : vector<4x128xf32> to vector<4x32xf32>
    %201 = arith.negf %200 : vector<4x32xf32>
    %202 = math.exp %201 : vector<4x32xf32>
    %cst_83 = arith.constant 1.000000e+00 : f32
    %203 = vector.broadcast %cst_83 : f32 to vector<4x32xf32>
    %204 = arith.addf %203, %202 : vector<4x32xf32>
    %205 = arith.divf %203, %204 : vector<4x32xf32>
    %206 = vector.extract_strided_slice %199 {offsets = [0, 32], sizes = [4, 32], strides = [1, 1]} : vector<4x128xf32> to vector<4x32xf32>
    %207 = arith.negf %206 : vector<4x32xf32>
    %208 = math.exp %207 : vector<4x32xf32>
    %cst_84 = arith.constant 1.000000e+00 : f32
    %209 = vector.broadcast %cst_84 : f32 to vector<4x32xf32>
    %210 = arith.addf %209, %208 : vector<4x32xf32>
    %211 = arith.divf %209, %210 : vector<4x32xf32>
    %212 = vector.extract_strided_slice %199 {offsets = [0, 64], sizes = [4, 32], strides = [1, 1]} : vector<4x128xf32> to vector<4x32xf32>
    %213 = math.tanh %212 : vector<4x32xf32>
    %214 = vector.extract_strided_slice %199 {offsets = [0, 96], sizes = [4, 32], strides = [1, 1]} : vector<4x128xf32> to vector<4x32xf32>
    %215 = arith.negf %214 : vector<4x32xf32>
    %216 = math.exp %215 : vector<4x32xf32>
    %cst_85 = arith.constant 1.000000e+00 : f32
    %217 = vector.broadcast %cst_85 : f32 to vector<4x32xf32>
    %218 = arith.addf %217, %216 : vector<4x32xf32>
    %219 = arith.divf %217, %218 : vector<4x32xf32>
    %220 = arith.mulf %211, %189 : vector<4x32xf32>
    %221 = arith.mulf %205, %213 : vector<4x32xf32>
    %222 = arith.addf %220, %221 : vector<4x32xf32>
    %223 = math.tanh %222 : vector<4x32xf32>
    %224 = arith.mulf %219, %223 : vector<4x32xf32>
    %c4_86 = arith.constant 4 : index
    %c0_87 = arith.constant 0 : index
    %c0_88 = arith.constant 0 : index
    %225 = vector.load %arg1[%c4_86, %c0_87, %c0_88] : memref<8x4x32xf32, #tpu.memory_space<vmem>>, vector<1x4x32xf32>
    %226 = vector.shape_cast %225 : vector<1x4x32xf32> to vector<4x32xf32>
    %227 = arith.mulf %226, %224 : vector<4x32xf32>
    %cst_89 = arith.constant 1.000000e+00 : f32
    %228 = vector.broadcast %cst_89 : f32 to vector<4x32xf32>
    %229 = arith.subf %228, %226 : vector<4x32xf32>
    %230 = arith.mulf %229, %184 : vector<4x32xf32>
    %231 = arith.addf %227, %230 : vector<4x32xf32>
    %232 = arith.mulf %226, %222 : vector<4x32xf32>
    %cst_90 = arith.constant 1.000000e+00 : f32
    %233 = vector.broadcast %cst_90 : f32 to vector<4x32xf32>
    %234 = arith.subf %233, %226 : vector<4x32xf32>
    %235 = arith.mulf %234, %189 : vector<4x32xf32>
    %236 = arith.addf %232, %235 : vector<4x32xf32>
    %c5 = arith.constant 5 : index
    %c0_91 = arith.constant 0 : index
    %c0_92 = arith.constant 0 : index
    %237 = vector.load %arg0[%c5, %c0_91, %c0_92] : memref<8x4x32xf32, #tpu.memory_space<vmem>>, vector<1x4x32xf32>
    %238 = vector.shape_cast %237 : vector<1x4x32xf32> to vector<4x32xf32>
    %c0_93 = arith.constant 0 : index
    %c0_94 = arith.constant 0 : index
    %239 = vector.load %arg2[%c0_93, %c0_94] : memref<32x128xf32, #tpu.memory_space<vmem>>, vector<32x128xf32>
    %cst_95 = arith.constant dense<0.000000e+00> : vector<4x128xf32>
    %240 = tpu.matmul %238, %239, %cst_95 {dimension_numbers = #tpu.dot_dimension_numbers<[1], [0], [0], [1], [0, 0, 1, 1], [], []>} : vector<4x32xf32>, vector<32x128xf32>, vector<4x128xf32> -> vector<4x128xf32>
    %c0_96 = arith.constant 0 : index
    %c0_97 = arith.constant 0 : index
    %241 = vector.load %arg3[%c0_96, %c0_97] : memref<32x128xf32, #tpu.memory_space<vmem>>, vector<32x128xf32>
    %cst_98 = arith.constant dense<0.000000e+00> : vector<4x128xf32>
    %242 = tpu.matmul %231, %241, %cst_98 {dimension_numbers = #tpu.dot_dimension_numbers<[1], [0], [0], [1], [0, 0, 1, 1], [], []>} : vector<4x32xf32>, vector<32x128xf32>, vector<4x128xf32> -> vector<4x128xf32>
    %243 = arith.addf %240, %242 : vector<4x128xf32>
    %c0_99 = arith.constant 0 : index
    %c0_100 = arith.constant 0 : index
    %244 = vector.load %arg4[%c0_99, %c0_100] : memref<1x128xf32, #tpu.memory_space<vmem>>, vector<1x128xf32>
    %245 = vector.broadcast %244 : vector<1x128xf32> to vector<4x128xf32>
    %246 = arith.addf %243, %245 : vector<4x128xf32>
    %247 = vector.extract_strided_slice %246 {offsets = [0, 0], sizes = [4, 32], strides = [1, 1]} : vector<4x128xf32> to vector<4x32xf32>
    %248 = arith.negf %247 : vector<4x32xf32>
    %249 = math.exp %248 : vector<4x32xf32>
    %cst_101 = arith.constant 1.000000e+00 : f32
    %250 = vector.broadcast %cst_101 : f32 to vector<4x32xf32>
    %251 = arith.addf %250, %249 : vector<4x32xf32>
    %252 = arith.divf %250, %251 : vector<4x32xf32>
    %253 = vector.extract_strided_slice %246 {offsets = [0, 32], sizes = [4, 32], strides = [1, 1]} : vector<4x128xf32> to vector<4x32xf32>
    %254 = arith.negf %253 : vector<4x32xf32>
    %255 = math.exp %254 : vector<4x32xf32>
    %cst_102 = arith.constant 1.000000e+00 : f32
    %256 = vector.broadcast %cst_102 : f32 to vector<4x32xf32>
    %257 = arith.addf %256, %255 : vector<4x32xf32>
    %258 = arith.divf %256, %257 : vector<4x32xf32>
    %259 = vector.extract_strided_slice %246 {offsets = [0, 64], sizes = [4, 32], strides = [1, 1]} : vector<4x128xf32> to vector<4x32xf32>
    %260 = math.tanh %259 : vector<4x32xf32>
    %261 = vector.extract_strided_slice %246 {offsets = [0, 96], sizes = [4, 32], strides = [1, 1]} : vector<4x128xf32> to vector<4x32xf32>
    %262 = arith.negf %261 : vector<4x32xf32>
    %263 = math.exp %262 : vector<4x32xf32>
    %cst_103 = arith.constant 1.000000e+00 : f32
    %264 = vector.broadcast %cst_103 : f32 to vector<4x32xf32>
    %265 = arith.addf %264, %263 : vector<4x32xf32>
    %266 = arith.divf %264, %265 : vector<4x32xf32>
    %267 = arith.mulf %258, %236 : vector<4x32xf32>
    %268 = arith.mulf %252, %260 : vector<4x32xf32>
    %269 = arith.addf %267, %268 : vector<4x32xf32>
    %270 = math.tanh %269 : vector<4x32xf32>
    %271 = arith.mulf %266, %270 : vector<4x32xf32>
    %c5_104 = arith.constant 5 : index
    %c0_105 = arith.constant 0 : index
    %c0_106 = arith.constant 0 : index
    %272 = vector.load %arg1[%c5_104, %c0_105, %c0_106] : memref<8x4x32xf32, #tpu.memory_space<vmem>>, vector<1x4x32xf32>
    %273 = vector.shape_cast %272 : vector<1x4x32xf32> to vector<4x32xf32>
    %274 = arith.mulf %273, %271 : vector<4x32xf32>
    %cst_107 = arith.constant 1.000000e+00 : f32
    %275 = vector.broadcast %cst_107 : f32 to vector<4x32xf32>
    %276 = arith.subf %275, %273 : vector<4x32xf32>
    %277 = arith.mulf %276, %231 : vector<4x32xf32>
    %278 = arith.addf %274, %277 : vector<4x32xf32>
    %279 = arith.mulf %273, %269 : vector<4x32xf32>
    %cst_108 = arith.constant 1.000000e+00 : f32
    %280 = vector.broadcast %cst_108 : f32 to vector<4x32xf32>
    %281 = arith.subf %280, %273 : vector<4x32xf32>
    %282 = arith.mulf %281, %236 : vector<4x32xf32>
    %283 = arith.addf %279, %282 : vector<4x32xf32>
    %c6 = arith.constant 6 : index
    %c0_109 = arith.constant 0 : index
    %c0_110 = arith.constant 0 : index
    %284 = vector.load %arg0[%c6, %c0_109, %c0_110] : memref<8x4x32xf32, #tpu.memory_space<vmem>>, vector<1x4x32xf32>
    %285 = vector.shape_cast %284 : vector<1x4x32xf32> to vector<4x32xf32>
    %c0_111 = arith.constant 0 : index
    %c0_112 = arith.constant 0 : index
    %286 = vector.load %arg2[%c0_111, %c0_112] : memref<32x128xf32, #tpu.memory_space<vmem>>, vector<32x128xf32>
    %cst_113 = arith.constant dense<0.000000e+00> : vector<4x128xf32>
    %287 = tpu.matmul %285, %286, %cst_113 {dimension_numbers = #tpu.dot_dimension_numbers<[1], [0], [0], [1], [0, 0, 1, 1], [], []>} : vector<4x32xf32>, vector<32x128xf32>, vector<4x128xf32> -> vector<4x128xf32>
    %c0_114 = arith.constant 0 : index
    %c0_115 = arith.constant 0 : index
    %288 = vector.load %arg3[%c0_114, %c0_115] : memref<32x128xf32, #tpu.memory_space<vmem>>, vector<32x128xf32>
    %cst_116 = arith.constant dense<0.000000e+00> : vector<4x128xf32>
    %289 = tpu.matmul %278, %288, %cst_116 {dimension_numbers = #tpu.dot_dimension_numbers<[1], [0], [0], [1], [0, 0, 1, 1], [], []>} : vector<4x32xf32>, vector<32x128xf32>, vector<4x128xf32> -> vector<4x128xf32>
    %290 = arith.addf %287, %289 : vector<4x128xf32>
    %c0_117 = arith.constant 0 : index
    %c0_118 = arith.constant 0 : index
    %291 = vector.load %arg4[%c0_117, %c0_118] : memref<1x128xf32, #tpu.memory_space<vmem>>, vector<1x128xf32>
    %292 = vector.broadcast %291 : vector<1x128xf32> to vector<4x128xf32>
    %293 = arith.addf %290, %292 : vector<4x128xf32>
    %294 = vector.extract_strided_slice %293 {offsets = [0, 0], sizes = [4, 32], strides = [1, 1]} : vector<4x128xf32> to vector<4x32xf32>
    %295 = arith.negf %294 : vector<4x32xf32>
    %296 = math.exp %295 : vector<4x32xf32>
    %cst_119 = arith.constant 1.000000e+00 : f32
    %297 = vector.broadcast %cst_119 : f32 to vector<4x32xf32>
    %298 = arith.addf %297, %296 : vector<4x32xf32>
    %299 = arith.divf %297, %298 : vector<4x32xf32>
    %300 = vector.extract_strided_slice %293 {offsets = [0, 32], sizes = [4, 32], strides = [1, 1]} : vector<4x128xf32> to vector<4x32xf32>
    %301 = arith.negf %300 : vector<4x32xf32>
    %302 = math.exp %301 : vector<4x32xf32>
    %cst_120 = arith.constant 1.000000e+00 : f32
    %303 = vector.broadcast %cst_120 : f32 to vector<4x32xf32>
    %304 = arith.addf %303, %302 : vector<4x32xf32>
    %305 = arith.divf %303, %304 : vector<4x32xf32>
    %306 = vector.extract_strided_slice %293 {offsets = [0, 64], sizes = [4, 32], strides = [1, 1]} : vector<4x128xf32> to vector<4x32xf32>
    %307 = math.tanh %306 : vector<4x32xf32>
    %308 = vector.extract_strided_slice %293 {offsets = [0, 96], sizes = [4, 32], strides = [1, 1]} : vector<4x128xf32> to vector<4x32xf32>
    %309 = arith.negf %308 : vector<4x32xf32>
    %310 = math.exp %309 : vector<4x32xf32>
    %cst_121 = arith.constant 1.000000e+00 : f32
    %311 = vector.broadcast %cst_121 : f32 to vector<4x32xf32>
    %312 = arith.addf %311, %310 : vector<4x32xf32>
    %313 = arith.divf %311, %312 : vector<4x32xf32>
    %314 = arith.mulf %305, %283 : vector<4x32xf32>
    %315 = arith.mulf %299, %307 : vector<4x32xf32>
    %316 = arith.addf %314, %315 : vector<4x32xf32>
    %317 = math.tanh %316 : vector<4x32xf32>
    %318 = arith.mulf %313, %317 : vector<4x32xf32>
    %c6_122 = arith.constant 6 : index
    %c0_123 = arith.constant 0 : index
    %c0_124 = arith.constant 0 : index
    %319 = vector.load %arg1[%c6_122, %c0_123, %c0_124] : memref<8x4x32xf32, #tpu.memory_space<vmem>>, vector<1x4x32xf32>
    %320 = vector.shape_cast %319 : vector<1x4x32xf32> to vector<4x32xf32>
    %321 = arith.mulf %320, %318 : vector<4x32xf32>
    %cst_125 = arith.constant 1.000000e+00 : f32
    %322 = vector.broadcast %cst_125 : f32 to vector<4x32xf32>
    %323 = arith.subf %322, %320 : vector<4x32xf32>
    %324 = arith.mulf %323, %278 : vector<4x32xf32>
    %325 = arith.addf %321, %324 : vector<4x32xf32>
    %326 = arith.mulf %320, %316 : vector<4x32xf32>
    %cst_126 = arith.constant 1.000000e+00 : f32
    %327 = vector.broadcast %cst_126 : f32 to vector<4x32xf32>
    %328 = arith.subf %327, %320 : vector<4x32xf32>
    %329 = arith.mulf %328, %283 : vector<4x32xf32>
    %330 = arith.addf %326, %329 : vector<4x32xf32>
    %c7 = arith.constant 7 : index
    %c0_127 = arith.constant 0 : index
    %c0_128 = arith.constant 0 : index
    %331 = vector.load %arg0[%c7, %c0_127, %c0_128] : memref<8x4x32xf32, #tpu.memory_space<vmem>>, vector<1x4x32xf32>
    %332 = vector.shape_cast %331 : vector<1x4x32xf32> to vector<4x32xf32>
    %c0_129 = arith.constant 0 : index
    %c0_130 = arith.constant 0 : index
    %333 = vector.load %arg2[%c0_129, %c0_130] : memref<32x128xf32, #tpu.memory_space<vmem>>, vector<32x128xf32>
    %cst_131 = arith.constant dense<0.000000e+00> : vector<4x128xf32>
    %334 = tpu.matmul %332, %333, %cst_131 {dimension_numbers = #tpu.dot_dimension_numbers<[1], [0], [0], [1], [0, 0, 1, 1], [], []>} : vector<4x32xf32>, vector<32x128xf32>, vector<4x128xf32> -> vector<4x128xf32>
    %c0_132 = arith.constant 0 : index
    %c0_133 = arith.constant 0 : index
    %335 = vector.load %arg3[%c0_132, %c0_133] : memref<32x128xf32, #tpu.memory_space<vmem>>, vector<32x128xf32>
    %cst_134 = arith.constant dense<0.000000e+00> : vector<4x128xf32>
    %336 = tpu.matmul %325, %335, %cst_134 {dimension_numbers = #tpu.dot_dimension_numbers<[1], [0], [0], [1], [0, 0, 1, 1], [], []>} : vector<4x32xf32>, vector<32x128xf32>, vector<4x128xf32> -> vector<4x128xf32>
    %337 = arith.addf %334, %336 : vector<4x128xf32>
    %c0_135 = arith.constant 0 : index
    %c0_136 = arith.constant 0 : index
    %338 = vector.load %arg4[%c0_135, %c0_136] : memref<1x128xf32, #tpu.memory_space<vmem>>, vector<1x128xf32>
    %339 = vector.broadcast %338 : vector<1x128xf32> to vector<4x128xf32>
    %340 = arith.addf %337, %339 : vector<4x128xf32>
    %341 = vector.extract_strided_slice %340 {offsets = [0, 0], sizes = [4, 32], strides = [1, 1]} : vector<4x128xf32> to vector<4x32xf32>
    %342 = arith.negf %341 : vector<4x32xf32>
    %343 = math.exp %342 : vector<4x32xf32>
    %cst_137 = arith.constant 1.000000e+00 : f32
    %344 = vector.broadcast %cst_137 : f32 to vector<4x32xf32>
    %345 = arith.addf %344, %343 : vector<4x32xf32>
    %346 = arith.divf %344, %345 : vector<4x32xf32>
    %347 = vector.extract_strided_slice %340 {offsets = [0, 32], sizes = [4, 32], strides = [1, 1]} : vector<4x128xf32> to vector<4x32xf32>
    %348 = arith.negf %347 : vector<4x32xf32>
    %349 = math.exp %348 : vector<4x32xf32>
    %cst_138 = arith.constant 1.000000e+00 : f32
    %350 = vector.broadcast %cst_138 : f32 to vector<4x32xf32>
    %351 = arith.addf %350, %349 : vector<4x32xf32>
    %352 = arith.divf %350, %351 : vector<4x32xf32>
    %353 = vector.extract_strided_slice %340 {offsets = [0, 64], sizes = [4, 32], strides = [1, 1]} : vector<4x128xf32> to vector<4x32xf32>
    %354 = math.tanh %353 : vector<4x32xf32>
    %355 = vector.extract_strided_slice %340 {offsets = [0, 96], sizes = [4, 32], strides = [1, 1]} : vector<4x128xf32> to vector<4x32xf32>
    %356 = arith.negf %355 : vector<4x32xf32>
    %357 = math.exp %356 : vector<4x32xf32>
    %cst_139 = arith.constant 1.000000e+00 : f32
    %358 = vector.broadcast %cst_139 : f32 to vector<4x32xf32>
    %359 = arith.addf %358, %357 : vector<4x32xf32>
    %360 = arith.divf %358, %359 : vector<4x32xf32>
    %361 = arith.mulf %352, %330 : vector<4x32xf32>
    %362 = arith.mulf %346, %354 : vector<4x32xf32>
    %363 = arith.addf %361, %362 : vector<4x32xf32>
    %364 = math.tanh %363 : vector<4x32xf32>
    %365 = arith.mulf %360, %364 : vector<4x32xf32>
    %c7_140 = arith.constant 7 : index
    %c0_141 = arith.constant 0 : index
    %c0_142 = arith.constant 0 : index
    %366 = vector.load %arg1[%c7_140, %c0_141, %c0_142] : memref<8x4x32xf32, #tpu.memory_space<vmem>>, vector<1x4x32xf32>
    %367 = vector.shape_cast %366 : vector<1x4x32xf32> to vector<4x32xf32>
    %368 = arith.mulf %367, %365 : vector<4x32xf32>
    %cst_143 = arith.constant 1.000000e+00 : f32
    %369 = vector.broadcast %cst_143 : f32 to vector<4x32xf32>
    %370 = arith.subf %369, %367 : vector<4x32xf32>
    %371 = arith.mulf %370, %325 : vector<4x32xf32>
    %372 = arith.addf %368, %371 : vector<4x32xf32>
    %c0_144 = arith.constant 0 : index
    %c0_145 = arith.constant 0 : index
    %373 = vector.load %arg5[%c0_144, %c0_145] : memref<32x32xf32, #tpu.memory_space<vmem>>, vector<32x32xf32>
    %cst_146 = arith.constant dense<0.000000e+00> : vector<4x32xf32>
    %374 = tpu.matmul %372, %373, %cst_146 {dimension_numbers = #tpu.dot_dimension_numbers<[1], [0], [0], [1], [0, 0, 1, 1], [], []>} : vector<4x32xf32>, vector<32x32xf32>, vector<4x32xf32> -> vector<4x32xf32>
    %c0_147 = arith.constant 0 : index
    %c0_148 = arith.constant 0 : index
    %375 = vector.load %arg6[%c0_147, %c0_148] : memref<1x32xf32, #tpu.memory_space<vmem>>, vector<1x32xf32>
    %376 = vector.broadcast %375 : vector<1x32xf32> to vector<4x32xf32>
    %377 = arith.addf %374, %376 : vector<4x32xf32>
    %c0_149 = arith.constant 0 : index
    %c0_150 = arith.constant 0 : index
    %378 = vector.load %arg7[%c0_149, %c0_150] : memref<4x32xf32, #tpu.memory_space<vmem>>, vector<4x32xf32>
    tpu.vector_store %arg7[%c0_149, %c0_150], %377 {strides = array<i32>} : memref<4x32xf32, #tpu.memory_space<vmem>>, vector<4x32xf32>,
    return
  }
}

module attributes {stable_mosaic.version = 11 : i64} {
  func.func @_head_kernel(%arg0: memref<4x32xf32, #tpu.memory_space<vmem>>, %arg1: memref<1x32xf32, #tpu.memory_space<vmem>>, %arg2: memref<1x32xf32, #tpu.memory_space<vmem>>, %arg3: memref<4x32xf32, #tpu.memory_space<vmem>>, %arg4: memref<32x64xf32, #tpu.memory_space<vmem>>, %arg5: memref<1x64xf32, #tpu.memory_space<vmem>>, %arg6: memref<64x64xf32, #tpu.memory_space<vmem>>, %arg7: memref<1x64xf32, #tpu.memory_space<vmem>>, %arg8: memref<32x32xf32, #tpu.memory_space<vmem>>, %arg9: memref<1x32xf32, #tpu.memory_space<vmem>>, %arg10: memref<32x32xf32, #tpu.memory_space<vmem>>, %arg11: memref<1x32xf32, #tpu.memory_space<vmem>>, %arg12: memref<32x1xf32, #tpu.memory_space<vmem>>, %arg13: memref<1x1xf32, #tpu.memory_space<vmem>>, %arg14: memref<32x32xf32, #tpu.memory_space<vmem>>, %arg15: memref<1x32xf32, #tpu.memory_space<vmem>>, %arg16: memref<4x1xf32, #tpu.memory_space<vmem>>, %arg17: memref<1x128xf32, #tpu.memory_space<vmem>>) attributes {dimension_semantics = [], scalar_prefetch = 0 : i64, scratch_operands = 0 : i64, tpu.core_type = #tpu.core_type<tc>} {
    %c0 = arith.constant 0 : index
    %c0_0 = arith.constant 0 : index
    %0 = vector.load %arg0[%c0, %c0_0] : memref<4x32xf32, #tpu.memory_space<vmem>>, vector<4x32xf32>
    %cst = arith.constant dense<0.000000e+00> : vector<4xf32>
    %1 = vector.multi_reduction <add>, %0, %cst [1] : vector<4x32xf32> to vector<4xf32>
    %2 = vector.shape_cast %1 : vector<4xf32> to vector<4x1xf32>
    %cst_1 = arith.constant 3.200000e+01 : f32
    %3 = vector.broadcast %cst_1 : f32 to vector<4x1xf32>
    %4 = arith.divf %2, %3 : vector<4x1xf32>
    %5 = vector.broadcast %4 : vector<4x1xf32> to vector<4x32xf32>
    %6 = arith.subf %0, %5 : vector<4x32xf32>
    %7 = arith.mulf %6, %6 : vector<4x32xf32>
    %cst_2 = arith.constant dense<0.000000e+00> : vector<4xf32>
    %8 = vector.multi_reduction <add>, %7, %cst_2 [1] : vector<4x32xf32> to vector<4xf32>
    %9 = vector.shape_cast %8 : vector<4xf32> to vector<4x1xf32>
    %cst_3 = arith.constant 3.200000e+01 : f32
    %10 = vector.broadcast %cst_3 : f32 to vector<4x1xf32>
    %11 = arith.divf %9, %10 : vector<4x1xf32>
    %12 = vector.broadcast %4 : vector<4x1xf32> to vector<4x32xf32>
    %13 = arith.subf %0, %12 : vector<4x32xf32>
    %cst_4 = arith.constant 9.99999996E-13 : f32
    %14 = vector.broadcast %cst_4 : f32 to vector<4x1xf32>
    %15 = arith.addf %11, %14 : vector<4x1xf32>
    %16 = math.rsqrt %15 : vector<4x1xf32>
    %17 = vector.broadcast %16 : vector<4x1xf32> to vector<4x32xf32>
    %18 = arith.mulf %13, %17 : vector<4x32xf32>
    %c0_5 = arith.constant 0 : index
    %c0_6 = arith.constant 0 : index
    %19 = vector.load %arg1[%c0_5, %c0_6] : memref<1x32xf32, #tpu.memory_space<vmem>>, vector<1x32xf32>
    %20 = vector.broadcast %19 : vector<1x32xf32> to vector<4x32xf32>
    %21 = arith.mulf %18, %20 : vector<4x32xf32>
    %c0_7 = arith.constant 0 : index
    %c0_8 = arith.constant 0 : index
    %22 = vector.load %arg2[%c0_7, %c0_8] : memref<1x32xf32, #tpu.memory_space<vmem>>, vector<1x32xf32>
    %23 = vector.broadcast %22 : vector<1x32xf32> to vector<4x32xf32>
    %24 = arith.addf %21, %23 : vector<4x32xf32>
    %c0_9 = arith.constant 0 : index
    %c0_10 = arith.constant 0 : index
    %25 = vector.load %arg3[%c0_9, %c0_10] : memref<4x32xf32, #tpu.memory_space<vmem>>, vector<4x32xf32>
    %c0_11 = arith.constant 0 : index
    %c0_12 = arith.constant 0 : index
    %26 = vector.load %arg4[%c0_11, %c0_12] : memref<32x64xf32, #tpu.memory_space<vmem>>, vector<32x64xf32>
    %cst_13 = arith.constant dense<0.000000e+00> : vector<4x64xf32>
    %27 = tpu.matmul %24, %26, %cst_13 {dimension_numbers = #tpu.dot_dimension_numbers<[1], [0], [0], [1], [0, 0, 1, 1], [], []>} : vector<4x32xf32>, vector<32x64xf32>, vector<4x64xf32> -> vector<4x64xf32>
    %c0_14 = arith.constant 0 : index
    %c0_15 = arith.constant 0 : index
    %28 = vector.load %arg5[%c0_14, %c0_15] : memref<1x64xf32, #tpu.memory_space<vmem>>, vector<1x64xf32>
    %29 = vector.broadcast %28 : vector<1x64xf32> to vector<4x64xf32>
    %30 = arith.addf %27, %29 : vector<4x64xf32>
    %cst_16 = arith.constant 0.000000e+00 : f32
    %31 = vector.broadcast %cst_16 : f32 to vector<4x64xf32>
    %32 = arith.maximumf %30, %31 : vector<4x64xf32>
    %c0_17 = arith.constant 0 : index
    %c0_18 = arith.constant 0 : index
    %33 = vector.load %arg6[%c0_17, %c0_18] : memref<64x64xf32, #tpu.memory_space<vmem>>, vector<64x64xf32>
    %cst_19 = arith.constant dense<0.000000e+00> : vector<4x64xf32>
    %34 = tpu.matmul %32, %33, %cst_19 {dimension_numbers = #tpu.dot_dimension_numbers<[1], [0], [0], [1], [0, 0, 1, 1], [], []>} : vector<4x64xf32>, vector<64x64xf32>, vector<4x64xf32> -> vector<4x64xf32>
    %c0_20 = arith.constant 0 : index
    %c0_21 = arith.constant 0 : index
    %35 = vector.load %arg7[%c0_20, %c0_21] : memref<1x64xf32, #tpu.memory_space<vmem>>, vector<1x64xf32>
    %36 = vector.broadcast %35 : vector<1x64xf32> to vector<4x64xf32>
    %37 = arith.addf %34, %36 : vector<4x64xf32>
    %38 = vector.extract_strided_slice %37 {offsets = [0, 0], sizes = [4, 32], strides = [1, 1]} : vector<4x64xf32> to vector<4x32xf32>
    %39 = vector.extract_strided_slice %37 {offsets = [0, 32], sizes = [4, 32], strides = [1, 1]} : vector<4x64xf32> to vector<4x32xf32>
    %40 = arith.subf %38, %25 : vector<4x32xf32>
    %41 = arith.mulf %40, %40 : vector<4x32xf32>
    %cst_22 = arith.constant 0.000000e+00 : f32
    %42 = vector.broadcast %cst_22 : f32 to vector<4x32xf32>
    %43 = arith.subf %42, %41 : vector<4x32xf32>
    %44 = math.exp %39 : vector<4x32xf32>
    %cst_23 = arith.constant 2.000000e+00 : f32
    %45 = vector.broadcast %cst_23 : f32 to vector<4x32xf32>
    %46 = arith.mulf %45, %44 : vector<4x32xf32>
    %47 = arith.divf %43, %46 : vector<4x32xf32>
    %cst_24 = arith.constant dense<0.000000e+00> : vector<4xf32>
    %48 = vector.multi_reduction <add>, %47, %cst_24 [1] : vector<4x32xf32> to vector<4xf32>
    %49 = vector.shape_cast %48 : vector<4xf32> to vector<4x1xf32>
    %cst_25 = arith.constant dense<0.000000e+00> : vector<1xf32>
    %50 = vector.multi_reduction <add>, %49, %cst_25 [0] : vector<4x1xf32> to vector<1xf32>
    %51 = vector.shape_cast %50 : vector<1xf32> to vector<1x1xf32>
    %cst_26 = arith.constant 4.000000e+00 : f32
    %52 = vector.broadcast %cst_26 : f32 to vector<1x1xf32>
    %53 = arith.divf %51, %52 : vector<1x1xf32>
    %c0_27 = arith.constant 0 : index
    %c0_28 = arith.constant 0 : index
    %54 = vector.load %arg8[%c0_27, %c0_28] : memref<32x32xf32, #tpu.memory_space<vmem>>, vector<32x32xf32>
    %cst_29 = arith.constant dense<0.000000e+00> : vector<4x32xf32>
    %55 = tpu.matmul %24, %54, %cst_29 {dimension_numbers = #tpu.dot_dimension_numbers<[1], [0], [0], [1], [0, 0, 1, 1], [], []>} : vector<4x32xf32>, vector<32x32xf32>, vector<4x32xf32> -> vector<4x32xf32>
    %c0_30 = arith.constant 0 : index
    %c0_31 = arith.constant 0 : index
    %56 = vector.load %arg9[%c0_30, %c0_31] : memref<1x32xf32, #tpu.memory_space<vmem>>, vector<1x32xf32>
    %57 = vector.broadcast %56 : vector<1x32xf32> to vector<4x32xf32>
    %58 = arith.addf %55, %57 : vector<4x32xf32>
    %59 = math.tanh %58 : vector<4x32xf32>
    %c0_32 = arith.constant 0 : index
    %c0_33 = arith.constant 0 : index
    %60 = vector.load %arg10[%c0_32, %c0_33] : memref<32x32xf32, #tpu.memory_space<vmem>>, vector<32x32xf32>
    %cst_34 = arith.constant dense<0.000000e+00> : vector<4x32xf32>
    %61 = tpu.matmul %59, %60, %cst_34 {dimension_numbers = #tpu.dot_dimension_numbers<[1], [0], [0], [1], [0, 0, 1, 1], [], []>} : vector<4x32xf32>, vector<32x32xf32>, vector<4x32xf32> -> vector<4x32xf32>
    %c0_35 = arith.constant 0 : index
    %c0_36 = arith.constant 0 : index
    %62 = vector.load %arg11[%c0_35, %c0_36] : memref<1x32xf32, #tpu.memory_space<vmem>>, vector<1x32xf32>
    %63 = vector.broadcast %62 : vector<1x32xf32> to vector<4x32xf32>
    %64 = arith.addf %61, %63 : vector<4x32xf32>
    %65 = math.tanh %64 : vector<4x32xf32>
    %c0_37 = arith.constant 0 : index
    %c0_38 = arith.constant 0 : index
    %66 = vector.load %arg12[%c0_37, %c0_38] : memref<32x1xf32, #tpu.memory_space<vmem>>, vector<32x1xf32>
    %cst_39 = arith.constant dense<0.000000e+00> : vector<4x1xf32>
    %67 = tpu.matmul %65, %66, %cst_39 {dimension_numbers = #tpu.dot_dimension_numbers<[1], [0], [0], [1], [0, 0, 1, 1], [], []>} : vector<4x32xf32>, vector<32x1xf32>, vector<4x1xf32> -> vector<4x1xf32>
    %c0_40 = arith.constant 0 : index
    %c0_41 = arith.constant 0 : index
    %68 = vector.load %arg13[%c0_40, %c0_41] : memref<1x1xf32, #tpu.memory_space<vmem>>, vector<1x1xf32>
    %69 = vector.broadcast %68 : vector<1x1xf32> to vector<4x1xf32>
    %70 = arith.addf %67, %69 : vector<4x1xf32>
    %c0_42 = arith.constant 0 : index
    %c0_43 = arith.constant 0 : index
    %71 = vector.load %arg16[%c0_42, %c0_43] : memref<4x1xf32, #tpu.memory_space<vmem>>, vector<4x1xf32>
    tpu.vector_store %arg16[%c0_42, %c0_43], %70 {strides = array<i32>} : memref<4x1xf32, #tpu.memory_space<vmem>>, vector<4x1xf32>,
    %c0_44 = arith.constant 0 : index
    %c0_45 = arith.constant 0 : index
    %72 = vector.load %arg14[%c0_44, %c0_45] : memref<32x32xf32, #tpu.memory_space<vmem>>, vector<32x32xf32>
    %cst_46 = arith.constant dense<0.000000e+00> : vector<4x32xf32>
    %73 = tpu.matmul %65, %72, %cst_46 {dimension_numbers = #tpu.dot_dimension_numbers<[1], [0], [0], [1], [0, 0, 1, 1], [], []>} : vector<4x32xf32>, vector<32x32xf32>, vector<4x32xf32> -> vector<4x32xf32>
    %c0_47 = arith.constant 0 : index
    %c0_48 = arith.constant 0 : index
    %74 = vector.load %arg15[%c0_47, %c0_48] : memref<1x32xf32, #tpu.memory_space<vmem>>, vector<1x32xf32>
    %75 = vector.broadcast %74 : vector<1x32xf32> to vector<4x32xf32>
    %76 = arith.addf %73, %75 : vector<4x32xf32>
    %77 = arith.mulf %76, %76 : vector<4x32xf32>
    %cst_49 = arith.constant dense<0.000000e+00> : vector<4xf32>
    %78 = vector.multi_reduction <add>, %77, %cst_49 [1] : vector<4x32xf32> to vector<4xf32>
    %79 = vector.shape_cast %78 : vector<4xf32> to vector<4x1xf32>
    %cst_50 = arith.constant 9.99999996E-13 : f32
    %80 = vector.broadcast %cst_50 : f32 to vector<4x1xf32>
    %81 = arith.addf %79, %80 : vector<4x1xf32>
    %82 = math.rsqrt %81 : vector<4x1xf32>
    %83 = vector.broadcast %82 : vector<4x1xf32> to vector<4x32xf32>
    %84 = arith.mulf %76, %83 : vector<4x32xf32>
    %85 = arith.mulf %24, %24 : vector<4x32xf32>
    %cst_51 = arith.constant dense<0.000000e+00> : vector<4xf32>
    %86 = vector.multi_reduction <add>, %85, %cst_51 [1] : vector<4x32xf32> to vector<4xf32>
    %87 = vector.shape_cast %86 : vector<4xf32> to vector<4x1xf32>
    %cst_52 = arith.constant 9.99999996E-13 : f32
    %88 = vector.broadcast %cst_52 : f32 to vector<4x1xf32>
    %89 = arith.addf %87, %88 : vector<4x1xf32>
    %90 = math.rsqrt %89 : vector<4x1xf32>
    %91 = vector.broadcast %90 : vector<4x1xf32> to vector<4x32xf32>
    %92 = arith.mulf %24, %91 : vector<4x32xf32>
    %93 = arith.mulf %92, %84 : vector<4x32xf32>
    %cst_53 = arith.constant dense<0.000000e+00> : vector<4xf32>
    %94 = vector.multi_reduction <add>, %93, %cst_53 [1] : vector<4x32xf32> to vector<4xf32>
    %95 = vector.shape_cast %94 : vector<4xf32> to vector<4x1xf32>
    %96 = tpu.transpose %84, [1, 0] : vector<4x32xf32> -> vector<32x4xf32>
    %cst_54 = arith.constant dense<0.000000e+00> : vector<4x4xf32>
    %97 = tpu.matmul %92, %96, %cst_54 {dimension_numbers = #tpu.dot_dimension_numbers<[1], [0], [0], [1], [0, 0, 1, 1], [], []>} : vector<4x32xf32>, vector<32x4xf32>, vector<4x4xf32> -> vector<4x4xf32>
    %cst_55 = arith.constant dense<0xFF800000> : vector<4xf32>
    %98 = vector.multi_reduction <maximumf>, %97, %cst_55 [1] : vector<4x4xf32> to vector<4xf32>
    %99 = vector.shape_cast %98 : vector<4xf32> to vector<4x1xf32>
    %100 = vector.broadcast %99 : vector<4x1xf32> to vector<4x4xf32>
    %101 = arith.subf %97, %100 : vector<4x4xf32>
    %102 = math.exp %101 : vector<4x4xf32>
    %cst_56 = arith.constant dense<0.000000e+00> : vector<4xf32>
    %103 = vector.multi_reduction <add>, %102, %cst_56 [1] : vector<4x4xf32> to vector<4xf32>
    %104 = vector.shape_cast %103 : vector<4xf32> to vector<4x1xf32>
    %105 = math.log %104 : vector<4x1xf32>
    %106 = arith.addf %99, %105 : vector<4x1xf32>
    %107 = arith.subf %95, %106 : vector<4x1xf32>
    %cst_57 = arith.constant dense<0.000000e+00> : vector<1xf32>
    %108 = vector.multi_reduction <add>, %107, %cst_57 [0] : vector<4x1xf32> to vector<1xf32>
    %109 = vector.shape_cast %108 : vector<1xf32> to vector<1x1xf32>
    %cst_58 = arith.constant 0.000000e+00 : f32
    %110 = vector.broadcast %cst_58 : f32 to vector<1x1xf32>
    %111 = arith.subf %110, %109 : vector<1x1xf32>
    %cst_59 = arith.constant 4.000000e+00 : f32
    %112 = vector.broadcast %cst_59 : f32 to vector<1x1xf32>
    %113 = arith.divf %111, %112 : vector<1x1xf32>
    %114 = tpu.iota {dimensions = array<i32: 1>} : vector<1x128xi32>
    %c0_i32 = arith.constant 0 : i32
    %115 = vector.broadcast %c0_i32 : i32 to vector<1x128xi32>
    %116 = arith.cmpi eq, %114, %115 : vector<1x128xi32>
    %cst_60 = arith.constant 0.000000e+00 : f32
    %117 = vector.shape_cast %53 : vector<1x1xf32> to vector<1x1xf32>
    %118 = vector.broadcast %117 : vector<1x1xf32> to vector<1x128xf32>
    %119 = vector.broadcast %cst_60 : f32 to vector<1x128xf32>
    %120 = arith.select %116, %118, %119 : vector<1x128xi1>, vector<1x128xf32>
    %c1_i32 = arith.constant 1 : i32
    %121 = vector.broadcast %c1_i32 : i32 to vector<1x128xi32>
    %122 = arith.cmpi eq, %114, %121 : vector<1x128xi32>
    %cst_61 = arith.constant 0.000000e+00 : f32
    %123 = vector.shape_cast %113 : vector<1x1xf32> to vector<1x1xf32>
    %124 = vector.broadcast %123 : vector<1x1xf32> to vector<1x128xf32>
    %125 = vector.broadcast %cst_61 : f32 to vector<1x128xf32>
    %126 = arith.select %122, %124, %125 : vector<1x128xi1>, vector<1x128xf32>
    %127 = arith.addf %120, %126 : vector<1x128xf32>
    %c0_62 = arith.constant 0 : index
    %c0_63 = arith.constant 0 : index
    %128 = vector.load %arg17[%c0_62, %c0_63] : memref<1x128xf32, #tpu.memory_space<vmem>>, vector<1x128xf32>
    tpu.vector_store %arg17[%c0_62, %c0_63], %127 {strides = array<i32>} : memref<1x128xf32, #tpu.memory_space<vmem>>, vector<1x128xf32>,
    return
  }
}

</mosaic_0001>

<bundles_post_ra>
// kernel: mmim_forward.2
= control target key start
LH: loop header
LB: loop body
LE: loop exit
PB: predicated region body
PF: predicated region fallthrough
CT: control target
= control target key end

     0   :  { %v2154_v0 = vmov 0.0|0.0   ;;  %vm2155_vm0 = vmmov 0   ;;  %v2156_v8 = vmov 0.0   ;;  %vm35_vm1 = vcmask 261120   ;;  %s2157_s19 = smov 64   ;;  %s2159_s20 = smov 96   ;;  %s2474_s3 = inlined_call_operand.vmem [shape: f32[32,128], index: 3, kind: input, shape index: {}]   ;;  %s2475_s2 = inlined_call_operand.vmem [shape: f32[32,128], index: 2, kind: input, shape index: {}]   ;;  %s2476_s0 = inlined_call_operand.vmem [shape: f32[8,4,32], index: 0, kind: input, shape index: {}]   ;;  %s2477_s4 = inlined_call_operand.vmem [shape: f32[1,128], index: 4, kind: input, shape index: {}]   ;;  %s2478_s1 = inlined_call_operand.vmem [shape: f32[8,4,32], index: 1, kind: input, shape index: {}]   ;;  %s2479_s5 = inlined_call_operand.vmem [shape: f32[32,32], index: 5, kind: input, shape index: {}]   ;;  %s2480_s6 = inlined_call_operand.vmem [shape: f32[1,32], index: 6, kind: input, shape index: {}]   ;;  %s2481_s7 = inlined_call_operand.vmem [shape: f32[4,32], index: 7, kind: output, shape index: {}]  }
   0x1   :  { %1982 = vmatprep.subr.bf16.mxu0 %v2154_v0  ;;  %1988 = vmatprep.subr.bf16.mxu1 %v2154_v0  ;;  %v31_v1 = vld [vmem:[%s2474_s3] sm:$0xff]  ;;  %v32_v2 = vld [vmem:[%s2474_s3 + $0x8] sm:$0xff]  ;;  %v33_v6 = vld [vmem:[%s2474_s3 + $0x10] sm:$0xff]  ;;  %vm1664_vm2 = vcmask 257024  }
   0x2   :  { %v27_v3 = vld [vmem:[%s2475_s2] sm:$0xff]  ;;  %v2211_v4 = vpack.c.bf16 %v32_v2, %v31_v1  ;;  %v28_v5 = vld [vmem:[%s2475_s2 + $0x8] sm:$0xff]  ;;  %v34_v7 = vld [vmem:[%s2474_s3 + $0x18] sm:$0xff]  ;;  %1803 = vmatprep.mubr.msk.f32.mxu0 %vm2155_vm0, %v2156_v8  ;;  %1814 = vmatprep.mubr.msk.f32.mxu1 %vm2155_vm0, %v2156_v8 }
   0x3   :  { %v2226_v9 = vpack.c.bf16 %v28_v5, %v27_v3  ;;  %v29_v10 = vld [vmem:[%s2475_s2 + $0x10] sm:$0xff]  ;;  %v30_v11 = vld [vmem:[%s2475_s2 + $0x18] sm:$0xff]  ;;  %v2235_v12 = vpack.c.bf16 %v34_v7, %v33_v6  ;;  %v26_v14 = vld [vmem:[%s2476_s0] sm:$0xf] }
   0x4   :  { %1984 = vmatpush3.bf16.msra.mxu0 %v2211_v4  ;;  %v2239_v13 = vpack.c.bf16 %v30_v11, %v29_v10  ;;  %v2266_v17 = vld [vmem:[%s2477_s4] ss:$0 sm:$0xff]  ;;  %s2158_s4 = smov 32   ;;  %v1673_v39 = vld [vmem:[%s2476_s0 + $0x4] sm:$0xf] }
   0x5   :  { %1990 = vmatpush3.bf16.msra.mxu1 %v2226_v9  ;;  %1985 = vmatprep.subr.bf16.mxu0 %v2154_v0  ;;  %v214_v33 = vld [vmem:[%s2478_s1] sm:$0xf]  ;;  %v1678_v63 = vld [vmem:[%s2476_s0 + $0x8] sm:$0xf]  ;;  %v1677_v1 = vld [vmem:[%s2478_s1 + $0x4] sm:$0xf] }
   0x6   :  { %1991 = vmatprep.subr.bf16.mxu1 %v2154_v0  ;;  %v220_v34 = vsub.f32 1.0, %v214_v33  ;;  %v413_v5 = vsub.f32 1.0, %v1677_v1 }
   0x8   :  { %1987 = vmatpush3.bf16.msra.mxu0 %v2235_v12  ;;  %v221_v35 = vmul.f32 0.0, %v220_v34 }
   0x9   :  { %1993 = vmatpush3.bf16.msra.mxu1 %v2239_v13  ;;  %1994 = vmatprep.subr.bf16.mxu0 %v2154_v0 }
   0xa   :  { %2000 = vmatprep.subr.bf16.mxu1 %v2154_v0 }
   0xb   :  { %1804 = vmatmul.mubr.f32.vlgmr.msra.gmra.mrb[0].mxu0 %v2156_v8 }
   0xc   :  { %1815 = vmatmul.mubr.msk.f32.vlgmr.msra.gmra.mrb[0].mxu1 %vm35_vm1, %v26_v14  ;;  %1996 = vmatpush3.bf16.msra.mxu0 %v2211_v4 }
   0xd   :  { %2002 = vmatpush3.bf16.msra.mxu1 %v2226_v9  ;;  %1997 = vmatprep.subr.bf16.mxu0 %v2154_v0 }
   0xe   :  { %2003 = vmatprep.subr.bf16.mxu1 %v2154_v0  ;;  %1836 = vmatprep.mubr.msk.f32.mxu1 %vm2155_vm0, %v2156_v8 }
   0xf   :  { %1825 = vmatprep.mubr.msk.f32.mxu0 %vm2155_vm0, %v2156_v8 }
  0x10   :  { %1999 = vmatpush3.bf16.msra.mxu0 %v2235_v12 }
  0x11   :  { %2005 = vmatpush3.bf16.msra.mxu1 %v2239_v13  ;;  %2006 = vmatprep.subr.bf16.mxu0 %v2154_v0 }
  0x12   :  { %2012 = vmatprep.subr.bf16.mxu1 %v2154_v0 }
  0x14   :  { %1837 = vmatmul.mubr.msk.f32.vlgmr.msra.gmra.mrb[2].mxu1 %vm35_vm1, %v1673_v39 }
  0x15   :  { %2014 = vmatpush3.bf16.msra.mxu1 %v2226_v9  ;;  %1858 = vmatprep.mubr.msk.f32.mxu1 %vm2155_vm0, %v2156_v8 }
  0x16   :  { %2015 = vmatprep.subr.bf16.mxu1 %v2154_v0 }
  0x19   :  { %2017 = vmatpush3.bf16.msra.mxu1 %v2239_v13 }
  0x1a   :  { %2024 = vmatprep.subr.bf16.mxu1 %v2154_v0 }
  0x1c   :  { %1859 = vmatmul.mubr.msk.f32.vlgmr.msra.gmra.mrb[4].mxu1 %vm35_vm1, %v1678_v63 }
  0x1d   :  { %2026 = vmatpush3.bf16.msra.mxu1 %v2226_v9  ;;  %1880 = vmatprep.mubr.msk.f32.mxu1 %vm2155_vm0, %v2156_v8 }
  0x1e   :  { %2027 = vmatprep.subr.bf16.mxu1 %v2154_v0 }
  0x21   :  { %2029 = vmatpush3.bf16.msra.mxu1 %v2239_v13 }
  0x22   :  { %2036 = vmatprep.subr.bf16.mxu1 %v2154_v0 }
  0xde   :  { %v105_v15 = vpop.f32.mrb[0].mxu0 }
  0xdf   :  { %v178_v16 = vpop.f32.mrb[0].mxu1  ;;  %v1805_v18 = vpop.f32.mrb[1].mxu0 }
  0xe0   :  { %v179_v19 = vadd.f32 %v178_v16, %v105_v15  ;;  %v1816_v20 = vpop.f32.mrb[1].mxu1 }
  0xe2   :  { %v189_v21 = vadd.f32 %v2266_v17, %v179_v19 }
  0xe4   :  { %2090 = vtanh.f32 %v189_v21  ;;  %v1672_v23 = vmul.f32 -1.442695, %v189_v21 }
  0xe6   :  { %2092 = vpow2.f32 %v1672_v23 }
  0xe7   :  { %v373_v45 = vpop.f32.mrb[2].mxu1 }
  0xe8   :  { %v1838_v46 = vpop.f32.mrb[3].mxu1 }
  0xee   :  { %v2091_v22 = vpop.eup %2090 }
  0xef   :  { %199 = vrot.lane.b32.xlu0 %v2091_v22, %s2157_s19  ;;  %v567_v19 = vpop.f32.mrb[4].mxu1 }
  0xf0   :  { %v2093_v24 = vpop.eup %2092  ;;  %v1860_v20 = vpop.f32.mrb[5].mxu1 }
  0xf1   :  { %v193_v25 = vadd.f32 1.0, %v2093_v24 }
  0xf3   :  { %2094 = vrcp.f32 %v193_v25 }
  0xfd   :  { %v2095_v26 = vpop.eup %2094 }
  0xfe   :  { %v197_v29 = vmul.f32 0.0, %v2095_v26 }
 0x161   :  { %v200_v27 = vpop.permute.xlu0 %199 }
 0x162   :  { %v202_v28 = vmul.f32 %v2095_v26, %v200_v27 }
 0x164   :  { %204 = vrot.lane.b32.xlu0 %v202_v28, %s2158_s4 }
 0x1d6   :  { %v205_v30 = vpop.permute.xlu0 %204 }
 0x1d7   :  { %v207_v31 = vadd.f32 %v205_v30, %v197_v29 }
 0x1d9   :  { %2096 = vtanh.f32 %v207_v31  ;;  %224 = vrot.lane.b32.xlu0 %v207_v31, %s2159_s20 }
 0x1e3   :  { %v2097_v32 = vpop.eup %2096 }
 0x1e4   :  { %210 = vrot.lane.b32.xlu1 %v2097_v32, %s2157_s19 }
 0x24b   :  { %v225_v36 = vpop.permute.xlu0 %224 }
 0x24c   :  { %v227_v37 = vmul.f32 %v225_v36, %v214_v33 }
 0x24e   :  { %v228_v38 = vadd.f32 %v227_v37, %v221_v35  ;;  %v1683_v37 = vld [vmem:[%s2476_s0 + $0xc] sm:$0xf] }
 0x24f   :  { %1881 = vmatmul.mubr.msk.f32.vlgmr.msra.gmra.mrb[6].mxu1 %vm35_vm1, %v1683_v37 }
 0x250   :  { %386 = vrot.lane.b32.xlu0 %v228_v38, %s2158_s4  ;;  %v421_v7 = vmul.f32 %v413_v5, %v228_v38  ;;  %2038 = vmatpush3.bf16.msra.mxu1 %v2226_v9  ;;  %v1682_v38 = vld [vmem:[%s2478_s1 + $0x8] sm:$0xf] }
 0x251   :  { %1902 = vmatprep.mubr.msk.f32.mxu1 %vm2155_vm0, %v2156_v8  ;;  %2039 = vmatprep.subr.bf16.mxu1 %v2154_v0 }
 0x254   :  { %2041 = vmatpush3.bf16.msra.mxu1 %v2239_v13 }
 0x255   :  { %2048 = vmatprep.subr.bf16.mxu1 %v2154_v0 }
 0x256   :  { %v211_v40 = vpop.permute.xlu1 %210 }
 0x257   :  { %v213_v41 = vmul.f32 %v2095_v26, %v211_v40 }
 0x259   :  { %216 = vrot.lane.b32.xlu1 %v213_v41, %s2158_s4  ;;  %v607_v41 = vsub.f32 1.0, %v1682_v38 }
 0x2c2   :  { %v387_v58 = vpop.permute.xlu0 %386 }
 0x2cb   :  { %v217_v42 = vpop.permute.xlu1 %216 }
 0x2cc   :  { %v219_v43 = vmul.f32 %v217_v42, %v214_v33 }
 0x2ce   :  { %v222_v44 = vadd.f32 %v221_v35, %v219_v43 }
 0x2d0   :  { %1826 = vmatmul.mubr.msk.f32.vlgmr.msra.gmra.mrb[2].mxu0 %vm35_vm1, %v222_v44  ;;  %v414_v15 = vmul.f32 %v413_v5, %v222_v44 }
 0x2d1   :  { %2008 = vmatpush3.bf16.msra.mxu0 %v2211_v4  ;;  %1847 = vmatprep.mubr.msk.f32.mxu0 %vm2155_vm0, %v2156_v8 }
 0x2d2   :  { %2009 = vmatprep.subr.bf16.mxu0 %v2154_v0 }
 0x2d5   :  { %2011 = vmatpush3.bf16.msra.mxu0 %v2235_v12 }
 0x2d6   :  { %2018 = vmatprep.subr.bf16.mxu0 %v2154_v0 }
 0x3a3   :  { %v300_v47 = vpop.f32.mrb[2].mxu0 }
 0x3a4   :  { %v374_v48 = vadd.f32 %v373_v45, %v300_v47  ;;  %v1827_v49 = vpop.f32.mrb[3].mxu0 }
 0x3a6   :  { %v377_v50 = vadd.f32 %v2266_v17, %v374_v48 }
 0x3a8   :  { %2098 = vtanh.f32 %v377_v50  ;;  %v1676_v52 = vmul.f32 -1.442695, %v377_v50  ;;  %v761_v50 = vpop.f32.mrb[6].mxu1 }
 0x3aa   :  { %2100 = vpow2.f32 %v1676_v52 }
 0x3b2   :  { %v2099_v51 = vpop.eup %2098 }
 0x3b3   :  { %391 = vrot.lane.b32.xlu1 %v2099_v51, %s2157_s19  ;;  %v1882_v51 = vpop.f32.mrb[7].mxu1 }
 0x3b4   :  { %v2101_v53 = vpop.eup %2100 }
 0x3b5   :  { %v381_v54 = vadd.f32 1.0, %v2101_v53 }
 0x3b7   :  { %2102 = vrcp.f32 %v381_v54 }
 0x3c1   :  { %v2103_v55 = vpop.eup %2102 }
 0x3c2   :  { %v389_v59 = vmul.f32 %v2103_v55, %v387_v58 }
 0x425   :  { %v392_v56 = vpop.permute.xlu1 %391 }
 0x426   :  { %v394_v57 = vmul.f32 %v2103_v55, %v392_v56 }
 0x428   :  { %396 = vrot.lane.b32.xlu1 %v394_v57, %s2158_s4 }
 0x49a   :  { %v397_v60 = vpop.permute.xlu1 %396 }
 0x49b   :  { %v399_v61 = vadd.f32 %v397_v60, %v389_v59 }
 0x49d   :  { %2104 = vtanh.f32 %v399_v61 }
 0x4a7   :  { %v2105_v62 = vpop.eup %2104 }
 0x4a8   :  { %402 = vrot.lane.b32.xlu0 %v2105_v62, %s2157_s19 }
 0x4ac   :  { %417 = vrot.lane.b32.xlu0 %v399_v61, %s2159_s20 }
 0x51a   :  { %v403_v2 = vpop.permute.xlu0 %402 }
 0x51b   :  { %v405_v3 = vmul.f32 %v2103_v55, %v403_v2 }
 0x51d   :  { %409 = vrot.lane.b32.xlu1 %v405_v3, %s2158_s4 }
 0x51e   :  { %v418_v6 = vpop.permute.xlu0 %417 }
 0x51f   :  { %v420_v10 = vmul.f32 %v1677_v1, %v418_v6  ;;  %v1688_v6 = vld [vmem:[%s2476_s0 + $0x10] sm:$0xf] }
 0x520   :  { %1903 = vmatmul.mubr.msk.f32.vlgmr.msra.gmra.mrb[8].mxu1 %vm35_vm1, %v1688_v6 }
 0x521   :  { %v422_v11 = vadd.f32 %v421_v7, %v420_v10  ;;  %2050 = vmatpush3.bf16.msra.mxu1 %v2226_v9  ;;  %1924 = vmatprep.mubr.msk.f32.mxu1 %vm2155_vm0, %v2156_v8  ;;  %v1687_v7 = vld [vmem:[%s2478_s1 + $0xc] sm:$0xf] }
 0x522   :  { %2051 = vmatprep.subr.bf16.mxu1 %v2154_v0 }
 0x523   :  { %580 = vrot.lane.b32.xlu0 %v422_v11, %s2158_s4  ;;  %v615_v43 = vmul.f32 %v607_v41, %v422_v11 }
 0x525   :  { %2053 = vmatpush3.bf16.msra.mxu1 %v2239_v13 }
 0x526   :  { %2060 = vmatprep.subr.bf16.mxu1 %v2154_v0 }
 0x58f   :  { %v410_v14 = vpop.permute.xlu1 %409 }
 0x590   :  { %v412_v16 = vmul.f32 %v1677_v1, %v410_v14  ;;  %v801_v14 = vsub.f32 1.0, %v1687_v7 }
 0x592   :  { %v415_v18 = vadd.f32 %v414_v15, %v412_v16 }
 0x594   :  { %1848 = vmatmul.mubr.msk.f32.vlgmr.msra.gmra.mrb[4].mxu0 %vm35_vm1, %v415_v18  ;;  %v608_v47 = vmul.f32 %v607_v41, %v415_v18 }
 0x595   :  { %2020 = vmatpush3.bf16.msra.mxu0 %v2211_v4  ;;  %1869 = vmatprep.mubr.msk.f32.mxu0 %vm2155_vm0, %v2156_v8  ;;  %v581_v32 = vpop.permute.xlu0 %580 }
 0x596   :  { %2021 = vmatprep.subr.bf16.mxu0 %v2154_v0 }
 0x599   :  { %2023 = vmatpush3.bf16.msra.mxu0 %v2235_v12 }
 0x59a   :  { %2030 = vmatprep.subr.bf16.mxu0 %v2154_v0 }
 0x667   :  { %v494_v21 = vpop.f32.mrb[4].mxu0 }
 0x668   :  { %v568_v22 = vadd.f32 %v567_v19, %v494_v21  ;;  %v1849_v23 = vpop.f32.mrb[5].mxu0 }
 0x66a   :  { %v571_v24 = vadd.f32 %v2266_v17, %v568_v22 }
 0x66c   :  { %2106 = vtanh.f32 %v571_v24  ;;  %v1681_v26 = vmul.f32 -1.442695, %v571_v24  ;;  %v955_v24 = vpop.f32.mrb[8].mxu1 }
 0x66e   :  { %2108 = vpow2.f32 %v1681_v26 }
 0x676   :  { %v2107_v25 = vpop.eup %2106 }
 0x677   :  { %585 = vrot.lane.b32.xlu1 %v2107_v25, %s2157_s19  ;;  %v1904_v25 = vpop.f32.mrb[9].mxu1 }
 0x678   :  { %v2109_v27 = vpop.eup %2108 }
 0x679   :  { %v575_v28 = vadd.f32 1.0, %v2109_v27 }
 0x67b   :  { %2110 = vrcp.f32 %v575_v28 }
 0x685   :  { %v2111_v29 = vpop.eup %2110 }
 0x686   :  { %v583_v33 = vmul.f32 %v2111_v29, %v581_v32 }
 0x6e9   :  { %v586_v30 = vpop.permute.xlu1 %585 }
 0x6ea   :  { %v588_v31 = vmul.f32 %v2111_v29, %v586_v30 }
 0x6ec   :  { %590 = vrot.lane.b32.xlu1 %v588_v31, %s2158_s4 }
 0x75e   :  { %v591_v34 = vpop.permute.xlu1 %590 }
 0x75f   :  { %v593_v35 = vadd.f32 %v591_v34, %v583_v33 }
 0x761   :  { %2112 = vtanh.f32 %v593_v35 }
 0x76b   :  { %v2113_v36 = vpop.eup %2112 }
 0x76c   :  { %596 = vrot.lane.b32.xlu0 %v2113_v36, %s2157_s19 }
 0x770   :  { %611 = vrot.lane.b32.xlu0 %v593_v35, %s2159_s20 }
 0x7de   :  { %v597_v39 = vpop.permute.xlu0 %596 }
 0x7df   :  { %v599_v40 = vmul.f32 %v2111_v29, %v597_v39 }
 0x7e1   :  { %603 = vrot.lane.b32.xlu1 %v599_v40, %s2158_s4 }
 0x7e2   :  { %v612_v42 = vpop.permute.xlu0 %611 }
 0x7e3   :  { %v614_v44 = vmul.f32 %v1682_v38, %v612_v42  ;;  %v1693_v42 = vld [vmem:[%s2476_s0 + $0x14] sm:$0xf] }
 0x7e4   :  { %1925 = vmatmul.mubr.msk.f32.vlgmr.msra.gmra.mrb[10].mxu1 %vm35_vm1, %v1693_v42 }
 0x7e5   :  { %v616_v45 = vadd.f32 %v615_v43, %v614_v44  ;;  %2062 = vmatpush3.bf16.msra.mxu1 %v2226_v9  ;;  %1946 = vmatprep.mubr.msk.f32.mxu1 %vm2155_vm0, %v2156_v8  ;;  %v1692_v43 = vld [vmem:[%s2478_s1 + $0x10] sm:$0xf] }
 0x7e6   :  { %2063 = vmatprep.subr.bf16.mxu1 %v2154_v0 }
 0x7e7   :  { %774 = vrot.lane.b32.xlu0 %v616_v45, %s2158_s4  ;;  %v809_v16 = vmul.f32 %v801_v14, %v616_v45 }
 0x7e9   :  { %2065 = vmatpush3.bf16.msra.mxu1 %v2239_v13 }
 0x7ea   :  { %2072 = vmatprep.subr.bf16.mxu1 %v2154_v0 }
 0x853   :  { %v604_v46 = vpop.permute.xlu1 %603 }
 0x854   :  { %v606_v48 = vmul.f32 %v1682_v38, %v604_v46  ;;  %v995_v46 = vsub.f32 1.0, %v1692_v43 }
 0x856   :  { %v609_v49 = vadd.f32 %v608_v47, %v606_v48 }
 0x858   :  { %1870 = vmatmul.mubr.msk.f32.vlgmr.msra.gmra.mrb[6].mxu0 %vm35_vm1, %v609_v49  ;;  %v802_v21 = vmul.f32 %v801_v14, %v609_v49 }
 0x859   :  { %2032 = vmatpush3.bf16.msra.mxu0 %v2211_v4  ;;  %1891 = vmatprep.mubr.msk.f32.mxu0 %vm2155_vm0, %v2156_v8  ;;  %v775_v63 = vpop.permute.xlu0 %774 }
 0x85a   :  { %2033 = vmatprep.subr.bf16.mxu0 %v2154_v0 }
 0x85d   :  { %2035 = vmatpush3.bf16.msra.mxu0 %v2235_v12 }
 0x85e   :  { %2042 = vmatprep.subr.bf16.mxu0 %v2154_v0 }
 0x92b   :  { %v688_v52 = vpop.f32.mrb[6].mxu0 }
 0x92c   :  { %v762_v53 = vadd.f32 %v761_v50, %v688_v52  ;;  %v1871_v54 = vpop.f32.mrb[7].mxu0 }
 0x92e   :  { %v765_v55 = vadd.f32 %v2266_v17, %v762_v53 }
 0x930   :  { %2114 = vtanh.f32 %v765_v55  ;;  %v1686_v57 = vmul.f32 -1.442695, %v765_v55  ;;  %v1149_v55 = vpop.f32.mrb[10].mxu1 }
 0x932   :  { %2116 = vpow2.f32 %v1686_v57 }
 0x93a   :  { %v2115_v56 = vpop.eup %2114 }
 0x93b   :  { %779 = vrot.lane.b32.xlu1 %v2115_v56, %s2157_s19  ;;  %v1926_v56 = vpop.f32.mrb[11].mxu1 }
 0x93c   :  { %v2117_v58 = vpop.eup %2116 }
 0x93d   :  { %v769_v59 = vadd.f32 1.0, %v2117_v58 }
 0x93f   :  { %2118 = vrcp.f32 %v769_v59 }
 0x949   :  { %v2119_v60 = vpop.eup %2118 }
 0x94a   :  { %v777_v1 = vmul.f32 %v2119_v60, %v775_v63 }
 0x9ad   :  { %v780_v61 = vpop.permute.xlu1 %779 }
 0x9ae   :  { %v782_v62 = vmul.f32 %v2119_v60, %v780_v61 }
 0x9b0   :  { %784 = vrot.lane.b32.xlu1 %v782_v62, %s2158_s4 }
 0xa22   :  { %v785_v2 = vpop.permute.xlu1 %784 }
 0xa23   :  { %v787_v3 = vadd.f32 %v785_v2, %v777_v1 }
 0xa25   :  { %2120 = vtanh.f32 %v787_v3 }
 0xa2f   :  { %v2121_v5 = vpop.eup %2120 }
 0xa30   :  { %790 = vrot.lane.b32.xlu0 %v2121_v5, %s2157_s19 }
 0xa34   :  { %805 = vrot.lane.b32.xlu0 %v787_v3, %s2159_s20 }
 0xaa2   :  { %v791_v10 = vpop.permute.xlu0 %790 }
 0xaa3   :  { %v793_v11 = vmul.f32 %v2119_v60, %v791_v10 }
 0xaa5   :  { %797 = vrot.lane.b32.xlu1 %v793_v11, %s2158_s4 }
 0xaa6   :  { %v806_v15 = vpop.permute.xlu0 %805 }
 0xaa7   :  { %v808_v18 = vmul.f32 %v1687_v7, %v806_v15  ;;  %v1698_v15 = vld [vmem:[%s2476_s0 + $0x18] sm:$0xf] }
 0xaa8   :  { %1947 = vmatmul.mubr.msk.f32.vlgmr.msra.gmra.mrb[12].mxu1 %vm35_vm1, %v1698_v15 }
 0xaa9   :  { %v810_v19 = vadd.f32 %v809_v16, %v808_v18  ;;  %2074 = vmatpush3.bf16.msra.mxu1 %v2226_v9  ;;  %1968 = vmatprep.mubr.msk.f32.mxu1 %vm2155_vm0, %v2156_v8  ;;  %v1697_v16 = vld [vmem:[%s2478_s1 + $0x14] sm:$0xf] }
 0xaaa   :  { %2075 = vmatprep.subr.bf16.mxu1 %v2154_v0 }
 0xaab   :  { %968 = vrot.lane.b32.xlu0 %v810_v19, %s2158_s4  ;;  %v1003_v48 = vmul.f32 %v995_v46, %v810_v19 }
 0xaad   :  { %2077 = vmatpush3.bf16.msra.mxu1 %v2239_v13 }
 0xb17   :  { %v798_v20 = vpop.permute.xlu1 %797 }
 0xb18   :  { %v800_v22 = vmul.f32 %v1687_v7, %v798_v20  ;;  %v1189_v20 = vsub.f32 1.0, %v1697_v16 }
 0xb1a   :  { %v803_v23 = vadd.f32 %v802_v21, %v800_v22 }
 0xb1c   :  { %1892 = vmatmul.mubr.msk.f32.vlgmr.msra.gmra.mrb[8].mxu0 %vm35_vm1, %v803_v23  ;;  %v996_v52 = vmul.f32 %v995_v46, %v803_v23 }
 0xb1d   :  { %2044 = vmatpush3.bf16.msra.mxu0 %v2211_v4  ;;  %1913 = vmatprep.mubr.msk.f32.mxu0 %vm2155_vm0, %v2156_v8  ;;  %v969_v37 = vpop.permute.xlu0 %968 }
 0xb1e   :  { %2045 = vmatprep.subr.bf16.mxu0 %v2154_v0 }
 0xb21   :  { %2047 = vmatpush3.bf16.msra.mxu0 %v2235_v12 }
 0xb22   :  { %2054 = vmatprep.subr.bf16.mxu0 %v2154_v0 }
 0xb7b   :  { %v1343_v13 = vpop.f32.mrb[12].mxu1 }
 0xbef   :  { %v882_v26 = vpop.f32.mrb[8].mxu0 }
 0xbf0   :  { %v956_v27 = vadd.f32 %v955_v24, %v882_v26  ;;  %v1893_v28 = vpop.f32.mrb[9].mxu0 }
 0xbf1   :  { %v1948_v28 = vpop.f32.mrb[13].mxu1 }
 0xbf2   :  { %v959_v29 = vadd.f32 %v2266_v17, %v956_v27 }
 0xbf4   :  { %2122 = vtanh.f32 %v959_v29  ;;  %v1691_v31 = vmul.f32 -1.442695, %v959_v29 }
 0xbf6   :  { %2124 = vpow2.f32 %v1691_v31 }
 0xbfe   :  { %v2123_v30 = vpop.eup %2122 }
 0xbff   :  { %973 = vrot.lane.b32.xlu1 %v2123_v30, %s2157_s19 }
 0xc00   :  { %v2125_v32 = vpop.eup %2124 }
 0xc01   :  { %v963_v33 = vadd.f32 1.0, %v2125_v32 }
 0xc03   :  { %2126 = vrcp.f32 %v963_v33 }
 0xc0d   :  { %v2127_v34 = vpop.eup %2126 }
 0xc0e   :  { %v971_v38 = vmul.f32 %v2127_v34, %v969_v37 }
 0xc71   :  { %v974_v35 = vpop.permute.xlu1 %973 }
 0xc72   :  { %v976_v36 = vmul.f32 %v2127_v34, %v974_v35 }
 0xc74   :  { %978 = vrot.lane.b32.xlu1 %v976_v36, %s2158_s4 }
 0xce6   :  { %v979_v39 = vpop.permute.xlu1 %978 }
 0xce7   :  { %v981_v40 = vadd.f32 %v979_v39, %v971_v38 }
 0xce9   :  { %2128 = vtanh.f32 %v981_v40 }
 0xcf3   :  { %v2129_v41 = vpop.eup %2128 }
 0xcf4   :  { %984 = vrot.lane.b32.xlu0 %v2129_v41, %s2157_s19 }
 0xcf8   :  { %999 = vrot.lane.b32.xlu0 %v981_v40, %s2159_s20 }
 0xd66   :  { %v985_v44 = vpop.permute.xlu0 %984 }
 0xd67   :  { %v987_v45 = vmul.f32 %v2127_v34, %v985_v44  ;;  %v1702_v44 = vld [vmem:[%s2478_s1 + $0x18] sm:$0xf] }
 0xd69   :  { %991 = vrot.lane.b32.xlu1 %v987_v45, %s2158_s4 }
 0xd6a   :  { %v1000_v47 = vpop.permute.xlu0 %999 }
 0xd6b   :  { %v1002_v49 = vmul.f32 %v1692_v43, %v1000_v47  ;;  %v1383_v47 = vsub.f32 1.0, %v1702_v44 }
 0xd6d   :  { %v1004_v50 = vadd.f32 %v1003_v48, %v1002_v49 }
 0xd6f   :  { %1162 = vrot.lane.b32.xlu0 %v1004_v50, %s2158_s4  ;;  %v1197_v22 = vmul.f32 %v1189_v20, %v1004_v50 }
 0xddb   :  { %v992_v51 = vpop.permute.xlu1 %991 }
 0xddc   :  { %v994_v53 = vmul.f32 %v1692_v43, %v992_v51  ;;  %v1703_v43 = vld [vmem:[%s2476_s0 + $0x1c] sm:$0xf] }
 0xddd   :  { %1969 = vmatmul.mubr.msk.f32.vlgmr.msra.gmra.mrb[14].mxu1 %vm35_vm1, %v1703_v43 }
 0xdde   :  { %v997_v54 = vadd.f32 %v996_v52, %v994_v53 }
 0xde0   :  { %1914 = vmatmul.mubr.msk.f32.vlgmr.msra.gmra.mrb[10].mxu0 %vm35_vm1, %v997_v54  ;;  %v1190_v25 = vmul.f32 %v1189_v20, %v997_v54 }
 0xde1   :  { %2056 = vmatpush3.bf16.msra.mxu0 %v2211_v4  ;;  %1935 = vmatprep.mubr.msk.f32.mxu0 %vm2155_vm0, %v2156_v8  ;;  %v1163_v6 = vpop.permute.xlu0 %1162 }
 0xde2   :  { %2057 = vmatprep.subr.bf16.mxu0 %v2154_v0 }
 0xde5   :  { %2059 = vmatpush3.bf16.msra.mxu0 %v2235_v12 }
 0xde6   :  { %2066 = vmatprep.subr.bf16.mxu0 %v2154_v0 }
 0xeb0   :  { %v1537_v56 = vpop.f32.mrb[14].mxu1 }
 0xeb3   :  { %v1076_v57 = vpop.f32.mrb[10].mxu0 }
 0xeb4   :  { %v1150_v58 = vadd.f32 %v1149_v55, %v1076_v57  ;;  %v1915_v59 = vpop.f32.mrb[11].mxu0  ;;  %v1970_v57 = vpop.f32.mrb[15].mxu1 }
 0xeb6   :  { %v1153_v60 = vadd.f32 %v2266_v17, %v1150_v58 }
 0xeb8   :  { %2130 = vtanh.f32 %v1153_v60  ;;  %v1696_v62 = vmul.f32 -1.442695, %v1153_v60 }
 0xeba   :  { %2132 = vpow2.f32 %v1696_v62 }
 0xec2   :  { %v2131_v61 = vpop.eup %2130 }
 0xec3   :  { %1167 = vrot.lane.b32.xlu1 %v2131_v61, %s2157_s19 }
 0xec4   :  { %v2133_v63 = vpop.eup %2132 }
 0xec5   :  { %v1157_v1 = vadd.f32 1.0, %v2133_v63 }
 0xec7   :  { %2134 = vrcp.f32 %v1157_v1 }
 0xed1   :  { %v2135_v2 = vpop.eup %2134 }
 0xed2   :  { %v1165_v7 = vmul.f32 %v2135_v2, %v1163_v6 }
 0xf35   :  { %v1168_v3 = vpop.permute.xlu1 %1167 }
 0xf36   :  { %v1170_v5 = vmul.f32 %v2135_v2, %v1168_v3 }
 0xf38   :  { %1172 = vrot.lane.b32.xlu1 %v1170_v5, %s2158_s4 }
 0xfaa   :  { %v1173_v10 = vpop.permute.xlu1 %1172 }
 0xfab   :  { %v1175_v11 = vadd.f32 %v1173_v10, %v1165_v7 }
 0xfad   :  { %2136 = vtanh.f32 %v1175_v11 }
 0xfb7   :  { %v2137_v14 = vpop.eup %2136 }
 0xfb8   :  { %1178 = vrot.lane.b32.xlu0 %v2137_v14, %s2157_s19  ;;  %v1581_v14 = vld [vmem:[%s2479_s5 + $0x8] sm:$0xff] }
 0xfbc   :  { %1193 = vrot.lane.b32.xlu0 %v1175_v11, %s2159_s20 }
0x102a   :  { %v1179_v18 = vpop.permute.xlu0 %1178 }
0x102b   :  { %v1181_v19 = vmul.f32 %v2135_v2, %v1179_v18  ;;  %v1582_v18 = vld [vmem:[%s2479_s5 + $0x10] sm:$0xff] }
0x102d   :  { %1185 = vrot.lane.b32.xlu1 %v1181_v19, %s2158_s4  ;;  %v1583_v19 = vld [vmem:[%s2479_s5 + $0x18] sm:$0xff] }
0x102e   :  { %v1194_v21 = vpop.permute.xlu0 %1193  ;;  %v2082_v20 = vpack.c.bf16 %v1583_v19, %v1582_v18 }
0x102f   :  { %v1196_v23 = vmul.f32 %v1697_v16, %v1194_v21 }
0x1031   :  { %v1198_v9 = vadd.f32 %v1197_v22, %v1196_v23 }
0x1033   :  { %1356 = vrot.lane.b32.xlu0 %v1198_v9, %s2158_s4  ;;  %v1391_v49 = vmul.f32 %v1383_v47, %v1198_v9 }
0x109f   :  { %v1186_v24 = vpop.permute.xlu1 %1185 }
0x10a0   :  { %v1188_v26 = vmul.f32 %v1697_v16, %v1186_v24 }
0x10a2   :  { %v1191_v27 = vadd.f32 %v1190_v25, %v1188_v26 }
0x10a4   :  { %1936 = vmatmul.mubr.msk.f32.vlgmr.msra.gmra.mrb[12].mxu0 %vm35_vm1, %v1191_v27  ;;  %v1384_v53 = vmul.f32 %v1383_v47, %v1191_v27  ;;  %v1708_v27 = vld [vmem:[%s2480_s6] ss:$0 sm:$0xff] }
0x10a5   :  { %2068 = vmatpush3.bf16.msra.mxu0 %v2211_v4  ;;  %1957 = vmatprep.mubr.msk.f32.mxu0 %vm2155_vm0, %v2156_v8  ;;  %v1357_v38 = vpop.permute.xlu0 %1356 }
0x10a6   :  { %2069 = vmatprep.subr.bf16.mxu0 %v2154_v0 }
0x10a9   :  { %2071 = vmatpush3.bf16.msra.mxu0 %v2235_v12 }
0x10aa   :  { %2078 = vmatprep.subr.bf16.mxu0 %v2154_v0 }
0x1177   :  { %v1270_v29 = vpop.f32.mrb[12].mxu0 }
0x1178   :  { %v1344_v30 = vadd.f32 %v1343_v13, %v1270_v29  ;;  %v1937_v31 = vpop.f32.mrb[13].mxu0 }
0x117a   :  { %v1347_v32 = vadd.f32 %v2266_v17, %v1344_v30 }
0x117c   :  { %2138 = vtanh.f32 %v1347_v32  ;;  %v1701_v4 = vmul.f32 -1.442695, %v1347_v32 }
0x117e   :  { %2140 = vpow2.f32 %v1701_v4 }
0x1186   :  { %v2139_v33 = vpop.eup %2138 }
0x1187   :  { %1361 = vrot.lane.b32.xlu1 %v2139_v33, %s2157_s19 }
0x1188   :  { %v2141_v34 = vpop.eup %2140 }
0x1189   :  { %v1351_v35 = vadd.f32 1.0, %v2141_v34 }
0x118b   :  { %2142 = vrcp.f32 %v1351_v35 }
0x1195   :  { %v2143_v36 = vpop.eup %2142 }
0x1196   :  { %v1359_v39 = vmul.f32 %v2143_v36, %v1357_v38 }
0x11f9   :  { %v1362_v12 = vpop.permute.xlu1 %1361 }
0x11fa   :  { %v1364_v37 = vmul.f32 %v2143_v36, %v1362_v12 }
0x11fc   :  { %1366 = vrot.lane.b32.xlu1 %v1364_v37, %s2158_s4 }
0x126e   :  { %v1367_v40 = vpop.permute.xlu1 %1366 }
0x126f   :  { %v1369_v41 = vadd.f32 %v1367_v40, %v1359_v39 }
0x1271   :  { %2144 = vtanh.f32 %v1369_v41 }
0x127b   :  { %v2145_v42 = vpop.eup %2144 }
0x127c   :  { %1372 = vrot.lane.b32.xlu0 %v2145_v42, %s2157_s19 }
0x1280   :  { %1387 = vrot.lane.b32.xlu0 %v1369_v41, %s2159_s20 }
0x12ee   :  { %v1373_v45 = vpop.permute.xlu0 %1372 }
0x12ef   :  { %v1375_v46 = vmul.f32 %v2143_v36, %v1373_v45 }
0x12f1   :  { %1379 = vrot.lane.b32.xlu1 %v1375_v46, %s2158_s4 }
0x12f2   :  { %v1388_v48 = vpop.permute.xlu0 %1387 }
0x12f3   :  { %v1390_v50 = vmul.f32 %v1702_v44, %v1388_v48 }
0x12f5   :  { %v1392_v51 = vadd.f32 %v1391_v49, %v1390_v50 }
0x12f7   :  { %1550 = vrot.lane.b32.xlu0 %v1392_v51, %s2158_s4 }
0x1363   :  { %v1380_v52 = vpop.permute.xlu1 %1379 }
0x1364   :  { %v1382_v54 = vmul.f32 %v1702_v44, %v1380_v52 }
0x1366   :  { %v1385_v55 = vadd.f32 %v1384_v53, %v1382_v54 }
0x1368   :  { %1958 = vmatmul.mubr.msk.f32.vlgmr.msra.gmra.mrb[14].mxu0 %vm35_vm1, %v1385_v55 }
0x1369   :  { %1979 = vmatprep.mubr.msk.f32.mxu0 %vm2155_vm0, %v2156_v8  ;;  %v1551_v8 = vpop.permute.xlu0 %1550 }
0x143b   :  { %v1464_v58 = vpop.f32.mrb[14].mxu0 }
0x143c   :  { %v1538_v59 = vadd.f32 %v1537_v56, %v1464_v58  ;;  %v1959_v60 = vpop.f32.mrb[15].mxu0 }
0x143e   :  { %v1541_v61 = vadd.f32 %v2266_v17, %v1538_v59  ;;  %v1580_v17 = vld [vmem:[%s2479_s5] sm:$0xff] }
0x143f   :  { %v2079_v15 = vpack.c.bf16 %v1581_v14, %v1580_v17 }
0x1440   :  { %2146 = vtanh.f32 %v1541_v61  ;;  %v1706_v63 = vmul.f32 -1.442695, %v1541_v61 }
0x1441   :  { %2080 = vmatpush3.bf16.msra.mxu0 %v2079_v15 }
0x1442   :  { %2148 = vpow2.f32 %v1706_v63  ;;  %2081 = vmatprep.subr.bf16.mxu0 %v2154_v0  ;;  %v1707_v0 = vld [vmem:[%s2478_s1 + $0x1c] sm:$0xf] }
0x1443   :  { %v1577_v23 = vsub.f32 1.0, %v1707_v0 }
0x1445   :  { %2083 = vmatpush3.bf16.msra.mxu0 %v2082_v20  ;;  %v1578_v24 = vmul.f32 %v1577_v23, %v1385_v55 }
0x144a   :  { %v2147_v62 = vpop.eup %2146 }
0x144b   :  { %1555 = vrot.lane.b32.xlu1 %v2147_v62, %s2157_s19 }
0x144c   :  { %v2149_v1 = vpop.eup %2148 }
0x144d   :  { %v1545_v2 = vadd.f32 1.0, %v2149_v1 }
0x144f   :  { %2150 = vrcp.f32 %v1545_v2 }
0x1459   :  { %v2151_v3 = vpop.eup %2150 }
0x145a   :  { %v1553_v7 = vmul.f32 %v2151_v3, %v1551_v8 }
0x14bd   :  { %v1556_v5 = vpop.permute.xlu1 %1555 }
0x14be   :  { %v1558_v6 = vmul.f32 %v2151_v3, %v1556_v5 }
0x14c0   :  { %1560 = vrot.lane.b32.xlu1 %v1558_v6, %s2158_s4 }
0x1532   :  { %v1561_v10 = vpop.permute.xlu1 %1560 }
0x1533   :  { %v1563_v11 = vadd.f32 %v1561_v10, %v1553_v7 }
0x1535   :  { %2152 = vtanh.f32 %v1563_v11 }
0x153f   :  { %v2153_v16 = vpop.eup %2152 }
0x1540   :  { %1566 = vrot.lane.b32.xlu0 %v2153_v16, %s2157_s19 }
0x15b2   :  { %v1567_v21 = vpop.permute.xlu0 %1566 }
0x15b3   :  { %v1569_v22 = vmul.f32 %v2151_v3, %v1567_v21 }
0x15b5   :  { %1573 = vrot.lane.b32.xlu1 %v1569_v22, %s2158_s4 }
0x1627   :  { %v1574_v9 = vpop.permute.xlu1 %1573 }
0x1628   :  { %v1576_v25 = vmul.f32 %v1707_v0, %v1574_v9 }
0x162a   :  { %v1579_v26 = vadd.f32 %v1578_v24, %v1576_v25 }
0x162c   :  { %1980 = vmatmul.mubr.msk.f32.vlgmr.msra.gmra.mrb[16].mxu0 %vm35_vm1, %v1579_v26 }
0x16ff   :  { %v1660_v13 = vpop.f32.mrb[16].mxu0 }
0x1700   :  { %v1661_v28 = vadd.f32 %v1708_v27, %v1660_v13  ;;  %v1981_v29 = vpop.f32.mrb[17].mxu0 }
0x1702   :  { %1665 = vst.msk [vmem:[%s2481_s7] sm:$0xf] %vm1664_vm2, %v1661_v28 }

// kernel: mmim_forward.3
= control target key start
LH: loop header
LB: loop body
LE: loop exit
PB: predicated region body
PF: predicated region fallthrough
CT: control target
= control target key end

     0   :  { %vm58_vm0 = vcmask 257024   ;;  %v952_v7 = vmov 0.0|0.0   ;;  %vm953_vm1 = vmmov 0   ;;  %v954_v11 = vmov 0.0   ;;  %s1217_s0 = inlined_call_operand.vmem [shape: f32[4,32], index: 0, kind: input, shape index: {}]   ;;  %s1218_s4 = inlined_call_operand.vmem [shape: f32[32,64], index: 4, kind: input, shape index: {}]   ;;  %s1219_s6 = inlined_call_operand.vmem [shape: f32[64,64], index: 6, kind: input, shape index: {}]   ;;  %s1220_s1 = inlined_call_operand.vmem [shape: f32[1,32], index: 1, kind: input, shape index: {}]   ;;  %s1221_s8 = inlined_call_operand.vmem [shape: f32[32,32], index: 8, kind: input, shape index: {}]   ;;  %s1222_s2 = inlined_call_operand.vmem [shape: f32[1,32], index: 2, kind: input, shape index: {}]   ;;  %s1223_s10 = inlined_call_operand.vmem [shape: f32[32,32], index: 10, kind: input, shape index: {}]   ;;  %s1224_s5 = inlined_call_operand.vmem [shape: f32[1,64], index: 5, kind: input, shape index: {}]   ;;  %s1225_s9 = inlined_call_operand.vmem [shape: f32[1,32], index: 9, kind: input, shape index: {}]   ;;  %s1226_s12 = inlined_call_operand.vmem [shape: f32[32,1], index: 12, kind: input, shape index: {}]   ;;  %s1227_s14 = inlined_call_operand.vmem [shape: f32[32,32], index: 14, kind: input, shape index: {}]   ;;  %s1228_s13 = inlined_call_operand.<no memory space> [shape: f32[1,1], index: 13, kind: input, shape index: {}]   ;;  %s1229_s11 = inlined_call_operand.vmem [shape: f32[1,32], index: 11, kind: input, shape index: {}]   ;;  %s1230_s15 = inlined_call_operand.vmem [shape: f32[1,32], index: 15, kind: input, shape index: {}]   ;;  %s1231_s7 = inlined_call_operand.vmem [shape: f32[1,64], index: 7, kind: input, shape index: {}]   ;;  %s1232_s16 = inlined_call_operand.vmem [shape: f32[4,1], index: 16, kind: output, shape index: {0}]   ;;  %s1233_s3 = inlined_call_operand.vmem [shape: f32[4,32], index: 3, kind: input, shape index: {}]   ;;  %s1234_s17 = inlined_call_operand.vmem [shape: f32[1,128], index: 17, kind: output, shape index: {1}]  }
   0x1   :  { %1236 = sst [smem:[#allocation3_spill]] %s1217_s0  ;;  %888 = vmatprep.subr.bf16.mxu0 %v952_v7  ;;  %817 = vmatprep.mubr.msk.f32.mxu0 %vm953_vm1, %v954_v11  ;;  %v176_v15 = vld [vmem:[%s1219_s6] sm:$0xff]  ;;  %v177_v16 = vld [vmem:[%s1219_s6 + $0x8] sm:$0xff]  ;;  %v178_v17 = vld [vmem:[%s1219_s6 + $0x10] sm:$0xff]  ;;  %vm101_vm2 = vcmask 261120   ;;  %vm191_vm3 = vcmask 523264  }
   0x2   :  { %1237 = sst [smem:[#allocation4_spill]] %s1218_s4  ;;  %s1238_s26 = sld [smem:[#allocation3_spill]]  ;;  %894 = vmatprep.subr.bf16.mxu1 %v952_v7  ;;  %836 = vmatprep.mubr.msk.f32.mxu1 %vm953_vm1, %v954_v11  ;;  %v895_v18 = vpack.c.bf16 %v177_v16, %v176_v15  ;;  %v179_v19 = vld [vmem:[%s1219_s6 + $0x18] sm:$0xff]  ;;  %v180_v21 = vld [vmem:[%s1219_s6 + $0x20] sm:$0xff]  ;;  %v181_v22 = vld [vmem:[%s1219_s6 + $0x28] sm:$0xff]  ;;  %vm541_vm4 = vcmask 3072  }
   0x3   :  { %s1239_s29 = sld [smem:[#allocation4_spill]]  ;;  %v898_v20 = vpack.c.bf16 %v179_v19, %v178_v17  ;;  %v901_v23 = vpack.c.bf16 %v181_v22, %v180_v21  ;;  %v757_v28 = vld [vmem:[%s1220_s1] ss:$0 sm:$0xff]  ;;  %v291_v31 = vld [vmem:[%s1221_s8 + $0x8] sm:$0xff]  ;;  %v292_v36 = vld [vmem:[%s1221_s8 + $0x10] sm:$0xff]  ;;  %vm718_vm5 = vcmask 27648  }
   0x4   :  { %896 = vmatpush3.bf16.msra.mxu1 %v895_v18  ;;  %v290_v30 = vld [vmem:[%s1221_s8] sm:$0xff]  ;;  %v293_v37 = vld [vmem:[%s1221_s8 + $0x18] sm:$0xff]  ;;  %v182_v39 = vld [vmem:[%s1219_s6 + $0x30] sm:$0xff]  ;;  %vm280_vm6 = vcmask 1043456  }
   0x5   :  { %897 = vmatprep.subr.bf16.mxu1 %v952_v7  ;;  %v758_v32 = vld [vmem:[%s1222_s2] ss:$0 sm:$0xff]  ;;  %v907_v34 = vpack.c.bf16 %v291_v31, %v290_v30  ;;  %v910_v38 = vpack.c.bf16 %v293_v37, %v292_v36  ;;  %v183_v40 = vld [vmem:[%s1219_s6 + $0x38] sm:$0xff]  ;;  %v373_v43 = vld [vmem:[%s1223_s10 + $0x8] sm:$0xff] }
   0x6   :  { %v904_v41 = vpack.c.bf16 %v183_v40, %v182_v39  ;;  %v372_v42 = vld [vmem:[%s1223_s10] sm:$0xff]  ;;  %v374_v44 = vld [vmem:[%s1223_s10 + $0x10] sm:$0xff]  ;;  %v375_v46 = vld [vmem:[%s1223_s10 + $0x18] sm:$0xff] }
   0x7   :  { %v913_v45 = vpack.c.bf16 %v373_v43, %v372_v42  ;;  %v916_v47 = vpack.c.bf16 %v375_v46, %v374_v44  ;;  %v759_v48 = vld [vmem:[%s1224_s5] ss:$0 sm:$0xff]  ;;  %v458_v59 = vld [vmem:[%s1226_s12 + $0x8] sm:$0xff]  ;;  %v459_v63 = vld [vmem:[%s1226_s12 + $0x10] sm:$0xff] }
   0x8   :  { %v57_v0 = vld [vmem:[%s1238_s26] sm:$0xf]  ;;  %899 = vmatpush3.bf16.msra.mxu1 %v898_v20  ;;  %v544_v62 = vld [vmem:[%s1227_s14 + $0x8] sm:$0xff] }
   0x9   :  { %v59_v1 = vsel %vm58_vm0, %v57_v0, 0.0  ;;  %v90_v8 = vld [vmem:[%s1239_s29] sm:$0xff]  ;;  %v91_v9 = vld [vmem:[%s1239_s29 + $0x8] sm:$0xff]  ;;  %v92_v10 = vld [vmem:[%s1239_s29 + $0x10] sm:$0xff]  ;;  %900 = vmatprep.subr.bf16.mxu1 %v952_v7 }
   0xa   :  { %60 = vadd.xlane.f32.xlu0 %v59_v1  ;;  %v889_v12 = vpack.c.bf16 %v91_v9, %v90_v8  ;;  %v93_v13 = vld [vmem:[%s1239_s29 + $0x18] sm:$0xff]  ;;  %v763_v53 = vld [vmem:[%s1225_s9] ss:$0 sm:$0xff] }
   0xb   :  { %v892_v14 = vpack.c.bf16 %v93_v13, %v92_v10  ;;  %v457_v58 = vld [vmem:[%s1226_s12] sm:$0xff] }
   0xc   :  { %890 = vmatpush3.bf16.msra.mxu0 %v889_v12  ;;  %902 = vmatpush3.bf16.msra.mxu1 %v901_v23  ;;  %v543_v60 = vld [vmem:[%s1227_s14] sm:$0xff]  ;;  %v919_v61 = vpack.c.bf16 %v458_v59, %v457_v58 }
   0xd   :  { %891 = vmatprep.subr.bf16.mxu0 %v952_v7  ;;  %903 = vmatprep.subr.bf16.mxu1 %v952_v7  ;;  %v925_v1 = vpack.c.bf16 %v544_v62, %v543_v60  ;;  %v765_v10 = vld [vmem:[%s1229_s11] ss:$0 sm:$0xff] }
   0xe   :  { %v769_v16 = vld [vmem:[%s1230_s15] ss:$0 sm:$0xff] }
   0xf   :  { %v761_v19 = vld [vmem:[%s1231_s7] ss:$0 sm:$0xff]  ;;  %s955_s7 = smov 96  }
  0x10   :  { %893 = vmatpush3.bf16.msra.mxu0 %v892_v14  ;;  %905 = vmatpush3.bf16.msra.mxu1 %v904_v41 }
  0x11   :  { %906 = vmatprep.subr.bf16.mxu0 %v952_v7  ;;  %918 = vmatprep.subr.bf16.mxu1 %v952_v7 }
  0x97   :  { %v61_v2 = vpop.xlane.xlu0 %60 }
  0x98   :  { %v63_v3 = vmul.f32 0.03125, %v61_v2  ;;  %v545_v2 = vld [vmem:[%s1227_s14 + $0x10] sm:$0xff] }
  0x9a   :  { %v64_v4 = vsub.f32 %v57_v0, %v63_v3  ;;  %v460_v0 = vld [vmem:[%s1226_s12 + $0x18] sm:$0xff] }
  0x9b   :  { %v546_v3 = vld [vmem:[%s1227_s14 + $0x18] sm:$0xff] }
  0x9c   :  { %v65_v5 = vmul.f32 %v64_v4, %v64_v4 }
  0x9e   :  { %v66_v6 = vsel %vm58_vm0, %v65_v5, 0.0  ;;  %v928_v5 = vpack.c.bf16 %v546_v3, %v545_v2 }
  0x9f   :  { %67 = vadd.xlane.f32.xlu0 %v66_v6  ;;  %v23_v6 = vstv %s1228_s13 }
  0xa0   :  { %24 = vst [vmem:[#allocation2] sm:$0x1] %v23_v6 }
  0xa7   :  { %v767_v15 = vld [vmem:[#allocation2] ss:$0 sm:$0xff] }
 0x12c   :  { %v68_v24 = vpop.xlane.xlu0 %67 }
 0x12d   :  { %v69_v25 = vmul.f32 0.03125, %v68_v24 }
 0x12f   :  { %v70_v26 = vadd.f32 1e-12, %v69_v25 }
 0x131   :  { %934 = vrsqrt.f32 %v70_v26 }
 0x13b   :  { %v935_v27 = vpop.eup %934 }
 0x13c   :  { %v72_v29 = vmul.f32 %v935_v27, %v64_v4  ;;  %v922_v4 = vpack.c.bf16 %v460_v0, %v459_v63 }
 0x13e   :  { %v80_v33 = vmul.f32 %v757_v28, %v72_v29 }
 0x140   :  { %v1104_v35 = vadd.f32 %v758_v32, %v80_v33 }
 0x142   :  { %818 = vmatmul.mubr.msk.f32.vlgmr.msra.gmra.mrb[0].mxu0 %vm101_vm2, %v1104_v35  ;;  %v631_v26 = vmul.f32 %v1104_v35, %v1104_v35 }
 0x143   :  { %908 = vmatpush3.bf16.msra.mxu0 %v907_v34  ;;  %847 = vmatprep.mubr.msk.f32.mxu0 %vm953_vm1, %v954_v11 }
 0x144   :  { %909 = vmatprep.subr.bf16.mxu0 %v952_v7  ;;  %v632_v28 = vsel %vm58_vm0, %v631_v26, 0.0 }
 0x147   :  { %911 = vmatpush3.bf16.msra.mxu0 %v910_v38 }
 0x148   :  { %912 = vmatprep.subr.bf16.mxu0 %v952_v7 }
 0x14a   :  { %848 = vmatmul.mubr.msk.f32.vlgmr.msra.gmra.mrb[2].mxu0 %vm101_vm2, %v1104_v35 }
 0x14b   :  { %858 = vmatprep.mubr.msk.f32.mxu0 %vm953_vm1, %v954_v11  ;;  %914 = vmatpush3.bf16.msra.mxu0 %v913_v45 }
 0x14c   :  { %915 = vmatprep.subr.bf16.mxu0 %v952_v7 }
 0x14f   :  { %917 = vmatpush3.bf16.msra.mxu0 %v916_v47 }
 0x150   :  { %924 = vmatprep.subr.bf16.mxu0 %v952_v7 }
 0x215   :  { %v171_v49 = vpop.f32.mrb[0].mxu0 }
 0x216   :  { %v172_v50 = vadd.f32 %v759_v48, %v171_v49  ;;  %v819_v51 = vpop.f32.mrb[1].mxu0  ;;  %v89_v48 = vld [vmem:[%s1233_s3] sm:$0xf] }
 0x218   :  { %v175_v52 = vmax.f32 %v172_v50, 0.0 }
 0x21a   :  { %837 = vmatmul.mubr.msk.f32.vlgmr.msra.gmra.mrb[0].mxu1 %vm191_vm3, %v175_v52 }
 0x21b   :  { %869 = vmatprep.mubr.msk.f32.mxu1 %vm953_vm1, %v954_v11  ;;  %920 = vmatpush3.bf16.msra.mxu1 %v919_v61 }
 0x21c   :  { %921 = vmatprep.subr.bf16.mxu1 %v952_v7 }
 0x21d   :  { %v367_v54 = vpop.f32.mrb[2].mxu0 }
 0x21e   :  { %v368_v55 = vadd.f32 %v763_v53, %v367_v54  ;;  %v849_v56 = vpop.f32.mrb[3].mxu0 }
 0x21f   :  { %923 = vmatpush3.bf16.msra.mxu1 %v922_v4 }
 0x220   :  { %936 = vtanh.f32 %v368_v55  ;;  %883 = vmatprep.subr.mxu1 %v954_v11 }
 0x22a   :  { %v937_v57 = vpop.eup %936 }
 0x22b   :  { %859 = vmatmul.mubr.msk.f32.vlgmr.msra.gmra.mrb[4].mxu0 %vm101_vm2, %v937_v57 }
 0x22c   :  { %880 = vmatprep.mubr.msk.f32.mxu0 %vm953_vm1, %v954_v11  ;;  %926 = vmatpush3.bf16.msra.mxu0 %v925_v1 }
 0x22d   :  { %927 = vmatprep.subr.bf16.mxu0 %v952_v7 }
 0x230   :  { %929 = vmatpush3.bf16.msra.mxu0 %v928_v5 }
 0x2ed   :  { %v261_v8 = vpop.f32.mrb[0].mxu1 }
 0x2ee   :  { %v838_v9 = vpop.f32.mrb[1].mxu1  ;;  %v262_v24 = vadd.f32 %v761_v19, %v261_v8 }
 0x2f0   :  { %v268_v27 = vmul.f32 1.442695, %v262_v24 }
 0x2fe   :  { %v452_v12 = vpop.f32.mrb[4].mxu0 }
 0x2ff   :  { %v453_v13 = vadd.f32 %v765_v10, %v452_v12  ;;  %v860_v14 = vpop.f32.mrb[5].mxu0  ;;  %v741_v12 = vlaneseq }
 0x301   :  { %938 = vtanh.f32 %v453_v13 }
 0x302   :  { %940 = vpow2.f32 %v268_v27 }
 0x30b   :  { %v939_v7 = vpop.eup %938 }
 0x30c   :  { %870 = vmatmul.mubr.msk.f32.vlgmr.msra.gmra.mrb[2].mxu1 %vm101_vm2, %v939_v7  ;;  %881 = vmatmul.mubr.msk.f32.vlgmr.msra.gmra.mrb[6].mxu0 %vm101_vm2, %v939_v7  ;;  %v941_v29 = vpop.eup %940 }
 0x30d   :  { %885 = vmatprep.mubr.msk.f32.mxu1 %vm953_vm1, %v954_v11  ;;  %v270_v30 = vmul.f32 2.0, %v941_v29 }
 0x3df   :  { %v537_v17 = vpop.f32.mrb[2].mxu1  ;;  %v620_v18 = vpop.f32.mrb[6].mxu0 }
 0x3e0   :  { %v538_v20 = vadd.f32 %v767_v15, %v537_v17  ;;  %v621_v21 = vadd.f32 %v769_v16, %v620_v18  ;;  %v871_v22 = vpop.f32.mrb[3].mxu1  ;;  %v882_v23 = vpop.f32.mrb[7].mxu0  ;;  %v742_v15 = vand.u32 127, %v741_v12 }
 0x3e2   :  { %542 = vst.msk [vmem:[%s1232_s16] sm:$0xf] %vm541_vm4, %v538_v20  ;;  %v624_v11 = vmul.f32 %v621_v21, %v621_v21  ;;  %vm743_vm7 = vcmp.eq.s32.totalorder %v742_v15, 0  ;;  %vm745_vm8 = vcmp.eq.s32.totalorder %v742_v15, 1 }
 0x3e4   :  { %v625_v25 = vsel %vm58_vm0, %v624_v11, 0.0 }
 0x3e5   :  { %626 = vadd.xlane.f32.xlu1 %v625_v25 }
 0x3e9   :  { %633 = vadd.xlane.f32.xlu1 %v632_v28 }
 0x3fa   :  { %272 = vrot.lane.b32.xlu1 %v270_v30, %s955_s7 }
 0x472   :  { %v627_v31 = vpop.xlane.xlu1 %626 }
 0x473   :  { %v628_v32 = vadd.f32 1e-12, %v627_v31 }
 0x475   :  { %942 = vrsqrt.f32 %v628_v32 }
 0x476   :  { %v634_v33 = vpop.xlane.xlu1 %633 }
 0x477   :  { %v635_v34 = vadd.f32 1e-12, %v634_v33 }
 0x479   :  { %944 = vrsqrt.f32 %v635_v34 }
 0x47a   :  { %v273_v47 = vpop.permute.xlu1 %272 }
 0x47f   :  { %v943_v36 = vpop.eup %942 }
 0x480   :  { %v630_v37 = vmul.f32 %v943_v36, %v621_v21 }
 0x482   :  { %884 = vmatpush3.xpose.msk.msra.mxu1 %vm101_vm2, %v630_v37 }
 0x483   :  { %v945_v38 = vpop.eup %944 }
 0x484   :  { %v637_v39 = vmul.f32 %v945_v38, %v1104_v35  ;;  %v265_v35 = vsub.f32 %v262_v24, %v89_v48 }
 0x486   :  { %886 = vmatmul.mubr.msk.f32.vlgmr.msra.gmra.mrb[4].mxu1 %vm101_vm2, %v637_v39  ;;  %v638_v40 = vmul.f32 %v637_v39, %v630_v37  ;;  %v266_v49 = vmul.f32 %v265_v35, %v265_v35 }
 0x488   :  { %v267_v53 = vsub.f32 0.0, %v266_v49  ;;  %v639_v54 = vsel %vm58_vm0, %v638_v40, 0.0 }
 0x559   :  { %v714_v41 = vpop.f32.mrb[4].mxu1 }
 0x55a   :  { %v887_v42 = vpop.f32.mrb[5].mxu1  ;;  %v719_v43 = vsel %vm718_vm5, %v714_v41, -inf }
 0x55b   :  { %720 = vmax.xlane.f32.xlu0 %v719_v43 }
 0x5e8   :  { %v721_v44 = vpop.xlane.xlu0 %720 }
 0x5e9   :  { %v722_v45 = vsub.f32 %v714_v41, %v721_v44 }
 0x5eb   :  { %v723_v46 = vmul.f32 1.442695, %v722_v45 }
 0x5ed   :  { %946 = vpow2.f32 %v723_v46 }
 0x5ee   :  { %948 = vrcp.f32 %v273_v47 }
 0x5f7   :  { %v947_v50 = vpop.eup %946 }
 0x5f8   :  { %v725_v51 = vsel %vm718_vm5, %v947_v50, 0.0  ;;  %v949_v52 = vpop.eup %948 }
 0x5f9   :  { %726 = vadd.xlane.f32.xlu0 %v725_v51  ;;  %v276_v55 = vmul.f32 %v949_v52, %v267_v53 }
 0x5fb   :  { %v277_v56 = vsel %vm58_vm0, %v276_v55, 0.0 }
 0x5fd   :  { %640 = vadd.xlane.f32.xlu0 %v639_v54 }
 0x601   :  { %278 = vadd.xlane.f32.xlu0 %v277_v56 }
 0x686   :  { %v727_v57 = vpop.xlane.xlu0 %726 }
 0x687   :  { %950 = vlog2.f32 %v727_v57 }
 0x68a   :  { %v641_v58 = vpop.xlane.xlu0 %640 }
 0x68e   :  { %v279_v59 = vpop.xlane.xlu0 %278 }
 0x68f   :  { %v281_v60 = vsel %vm280_vm6, %v279_v59, 0.0 }
 0x690   :  { %v282_v61 = vrot.slane %v281_v60, 4 }
 0x691   :  { %v951_v62 = vpop.eup %950 }
 0x692   :  { %v729_v63 = vmul.f32 0.6931472, %v951_v62  ;;  %v283_v0 = vadd.f32 %v282_v61, %v281_v60 }
 0x694   :  { %v730_v1 = vadd.f32 %v729_v63, %v721_v44  ;;  %v284_v2 = vrot.slane %v283_v0, 2 }
 0x696   :  { %v731_v3 = vsub.f32 %v641_v58, %v730_v1  ;;  %v285_v6 = vadd.f32 %v284_v2, %v283_v0 }
 0x698   :  { %v732_v4 = vsel %vm280_vm6, %v731_v3, 0.0  ;;  %v286_v10 = vrot.slane %v285_v6, 1 }
 0x699   :  { %v733_v5 = vrot.slane %v732_v4, 4 }
 0x69a   :  { %v287_v7 = vadd.f32 %v286_v10, %v285_v6 }
 0x69b   :  { %v734_v8 = vadd.f32 %v733_v5, %v732_v4 }
 0x69c   :  { %v289_v18 = vmul.f32 0.25, %v287_v7 }
 0x69d   :  { %v735_v9 = vrot.slane %v734_v8, 2 }
 0x69e   :  { %v744_v21 = vsel %vm743_vm7, %v289_v18, 0.0 }
 0x69f   :  { %v736_v13 = vadd.f32 %v735_v9, %v734_v8 }
 0x6a1   :  { %v737_v14 = vrot.slane %v736_v13, 1 }
 0x6a3   :  { %v738_v16 = vadd.f32 %v737_v14, %v736_v13 }
 0x6a5   :  { %v739_v17 = vsub.f32 0.0, %v738_v16 }
 0x6a7   :  { %v740_v19 = vmul.f32 0.25, %v739_v17 }
 0x6a9   :  { %v746_v20 = vsel %vm745_vm8, %v740_v19, 0.0 }
 0x6aa   :  { %v747_v22 = vadd.f32 %v746_v20, %v744_v21 }
 0x6ac   :  { %748 = vst [vmem:[%s1234_s17] sm:$0x1] %v747_v22 }

</bundles_post_ra>
